<compile_context>
chip_gen: v7x
topology: tpu7x:2x2x1
jax: 0.10.0
libtpu: 0.0.40
codegen_flags: <defaults>
</compile_context>

<pallas_src>
import jax
import jax.numpy as jnp
from jax.experimental import pallas as pl
from jax.experimental.pallas import tpu as pltpu


def _bcast_add_softmax_kernel(x_ref, y_ref, o_ref):
    # x_ref: (Bt, 1, N)  -- one broadcast row per batch element in this slab
    # y_ref: (Bt, M, N)
    # o_ref: (Bt, M, N)
    s = x_ref[...] + y_ref[...]                    # sublane-broadcast over M (VPU)
    m = jnp.max(s, axis=-1, keepdims=True)         # row max (XLU)
    e = jnp.exp(s - m)                             # EUP
    denom = jnp.sum(e, axis=-1, keepdims=True)     # XLU
    # Exact reciprocal: bit-accuracy vs. reference; VALU is not the bottleneck.
    o_ref[...] = e * pl.reciprocal(denom, approx=False)


def bcast_add_softmax(x, y, *, num_batch_blocks=2):
    """x: (B, 1, N) f32, y: (B, M, N) f32 -> softmax(x + y, axis=-1): (B, M, N)."""
    B, one, N = x.shape
    assert one == 1
    By, M, Ny = y.shape
    assert By == B and Ny == N

    # 2 parallel batch-slab steps (feeds both TCs on v7x, near-zero overhead on
    # single-TC chips).  Fall back to a single step if B doesn't split evenly.
    if B % num_batch_blocks != 0:
        num_batch_blocks = 1
    bt = B // num_batch_blocks

    return pl.pallas_call(
        _bcast_add_softmax_kernel,
        out_shape=jax.ShapeDtypeStruct((B, M, N), y.dtype),
        grid_spec=pltpu.PrefetchScalarGridSpec(
            num_scalar_prefetch=0,
            grid=(num_batch_blocks,),
            in_specs=[
                # x blocked over the same batch slab as y -> only `grid` DMAs
                # total instead of one tiny DMA per batch element.
                pl.BlockSpec((bt, 1, N), lambda b: (b, 0, 0)),
                pl.BlockSpec((bt, M, N), lambda b: (b, 0, 0)),
            ],
            out_specs=pl.BlockSpec((bt, M, N), lambda b: (b, 0, 0)),
        ),
        compiler_params=pltpu.CompilerParams(
            dimension_semantics=("parallel",),
        ),
    )(x, y)


def reference(x, y):
    # Pure-JAX reference mirroring the PyTorch module exactly.
    x4 = x.reshape((1,) + x.shape)
    y4 = y.reshape((1,) + y.shape)
    add = x4 + y4
    sm = jax.nn.softmax(add, axis=3)
    return sm.reshape(y.shape)


if __name__ == "__main__":
    # Shapes from the module's get_example_inputs(): x=(16,1,64), y=(16,64,64).
    B, M, N = 16, 64, 64
    key = jax.random.PRNGKey(0)
    kx, ky = jax.random.split(key)
    x = jax.random.normal(kx, (B, 1, N), dtype=jnp.float32)
    y = jax.random.normal(ky, (B, M, N), dtype=jnp.float32)

    out = bcast_add_softmax(x, y)
    out = jax.block_until_ready(out)

    ref = reference(x, y)
    assert out.shape == (B, M, N)
    assert jnp.allclose(out, ref, atol=1e-5, rtol=1e-5), "mismatch vs reference"

    print("KERNEL_OK")
</pallas_src>

<mosaic_0001>
module attributes {stable_mosaic.version = 11 : i64} {
  func.func @_bcast_add_softmax_kernel(%arg0: i32, %arg1: memref<8x1x64xf32, #tpu.memory_space<vmem>>, %arg2: memref<8x64x64xf32, #tpu.memory_space<vmem>>, %arg3: memref<8x64x64xf32, #tpu.memory_space<vmem>>) attributes {dimension_semantics = [#tpu.dimension_semantics<parallel>], iteration_bounds = array<i64: 2>, scalar_prefetch = 0 : i64, scratch_operands = 0 : i64, tpu.core_type = #tpu.core_type<tc>, window_params = [{transform_indices = @transform_0, window_bounds = array<i64: 8, 1, 64>}, {transform_indices = @transform_1, window_bounds = array<i64: 8, 64, 64>}, {transform_indices = @transform_2, window_bounds = array<i64: 8, 64, 64>}]} {
    %c0 = arith.constant 0 : index
    %c0_0 = arith.constant 0 : index
    %c0_1 = arith.constant 0 : index
    %0 = vector.load %arg1[%c0, %c0_0, %c0_1] : memref<8x1x64xf32, #tpu.memory_space<vmem>>, vector<8x1x64xf32>
    %c0_2 = arith.constant 0 : index
    %c0_3 = arith.constant 0 : index
    %c0_4 = arith.constant 0 : index
    %1 = vector.load %arg2[%c0_2, %c0_3, %c0_4] : memref<8x64x64xf32, #tpu.memory_space<vmem>>, vector<8x64x64xf32>
    %2 = vector.broadcast %0 : vector<8x1x64xf32> to vector<8x64x64xf32>
    %3 = arith.addf %2, %1 : vector<8x64x64xf32>
    %cst = arith.constant dense<0xFF800000> : vector<8x64xf32>
    %4 = vector.multi_reduction <maximumf>, %3, %cst [2] : vector<8x64x64xf32> to vector<8x64xf32>
    %5 = vector.shape_cast %4 : vector<8x64xf32> to vector<8x64x1xf32>
    %6 = vector.broadcast %5 : vector<8x64x1xf32> to vector<8x64x64xf32>
    %7 = arith.subf %3, %6 : vector<8x64x64xf32>
    %8 = math.exp %7 : vector<8x64x64xf32>
    %cst_5 = arith.constant dense<0.000000e+00> : vector<8x64xf32>
    %9 = vector.multi_reduction <add>, %8, %cst_5 [2] : vector<8x64x64xf32> to vector<8x64xf32>
    %10 = vector.shape_cast %9 : vector<8x64xf32> to vector<8x64x1xf32>
    %11 = tpu.reciprocal %10 : vector<8x64x1xf32> -> vector<8x64x1xf32>
    %12 = vector.broadcast %11 : vector<8x64x1xf32> to vector<8x64x64xf32>
    %13 = arith.mulf %8, %12 : vector<8x64x64xf32>
    %c0_6 = arith.constant 0 : index
    %c0_7 = arith.constant 0 : index
    %c0_8 = arith.constant 0 : index
    %14 = vector.load %arg3[%c0_6, %c0_7, %c0_8] : memref<8x64x64xf32, #tpu.memory_space<vmem>>, vector<8x64x64xf32>
    tpu.vector_store %arg3[%c0_6, %c0_7, %c0_8], %13 {strides = array<i32>} : memref<8x64x64xf32, #tpu.memory_space<vmem>>, vector<8x64x64xf32>,
    return
  }
  func.func @transform_0(%arg0: i32) -> (i32, i32, i32) {
    %c0_i32 = arith.constant 0 : i32
    %c0_i32_0 = arith.constant 0 : i32
    %c0_i32_1 = arith.constant 0 : i32
    return %arg0, %c0_i32, %c0_i32_0 : i32, i32, i32
  }
  func.func @transform_1(%arg0: i32) -> (i32, i32, i32) {
    %c0_i32 = arith.constant 0 : i32
    %c0_i32_0 = arith.constant 0 : i32
    %c0_i32_1 = arith.constant 0 : i32
    return %arg0, %c0_i32, %c0_i32_0 : i32, i32, i32
  }
  func.func @transform_2(%arg0: i32) -> (i32, i32, i32) {
    %c0_i32 = arith.constant 0 : i32
    %c0_i32_0 = arith.constant 0 : i32
    %c0_i32_1 = arith.constant 0 : i32
    return %arg0, %c0_i32, %c0_i32_0 : i32, i32, i32
  }
}

</mosaic_0001>

<bundles_post_ra>
// kernel: tpu_custom_call.1
= control target key start
LH: loop header
LB: loop body
LE: loop exit
PB: predicated region body
PF: predicated region fallthrough
CT: control target
= control target key end

     0   :  { %7 = vsyncpa [#allocation3], 0  ;;  %s2835_s0 = inlined_call_operand.hbm [shape: f32[16,1,64], index: 0, kind: input, shape index: {}]   ;;  %s2836_s1 = inlined_call_operand.hbm [shape: f32[16,64,64], index: 1, kind: input, shape index: {}]   ;;  %s2837_s2 = inlined_call_operand.hbm [shape: f32[16,64,64], index: 2, kind: output, shape index: {}]  }
   0x1   :  { %9 = vsyncpa [#allocation3 + $0x1], 0 }
   0x2   :  { %10 = vsyncpa [#allocation6], 0 }
   0x3   :  { %12 = vsyncpa [#allocation6 + $0x1], 0 }
   0x4   :  { %13 = vsyncpa [#allocation4], 0 }
   0x5   :  { %15 = vsyncpa [#allocation4 + $0x1], 0  ;;  %s1772_s9 = smov 0   ;;  %s1774_s10 = smov 0  }
   0x6   :  { %s1776_s11 = smov 0   ;;  %s1778_s12 = smov 0  }
   0x7 LB: > { %s1793_s13 = sadd.s32 4294967295, %s1746_s12   ;;  %s1270_s14 = sadd.s32 4294967294, %s1746_s12   ;;  %s1746_s12 = sphi %s1778_s12, %s2928_s12   ;;  %s1742_s11 = sphi %s1776_s11, %s2927_s11   ;;  %s1738_s10 = sphi %s1774_s10, %s2926_s10   ;;  %s1734_s9 = sphi %s1772_s9, %s2925_s9  }
   0x8   : > { %s1797_s15 = sadd.s32 1, %s1746_s12   ;;  %s28_s16 = sadd.s32 1, %s1742_s11 }
   0x9   : > { %s25_s17 = ssub.s32 %s1746_s12, %s1797_s15  ;;  %p35_p0 = scmp.ne.s32.totalorder %s1742_s11, %s1738_s10 }
   0xa   : > { %p26_p1 = scmp.eq.s32.totalorder %s25_s17, 0  ;;  %p36_p2 = scmp.eq.s32.totalorder %s1746_s12, 0 }
   0xb   : > { %p41_p3 = scmp.ne.s32.totalorder %s1738_s10, %s1734_s9  ;;  %p42_p4 = scmp.eq.s32.totalorder %s1793_s13, 0 }
   0xc   : > { %s1809_s18 = scalar_select %p26_p1, %s1742_s11, %s28_s16  }
   0xd   : > { %p1811_p5 = por %p36_p2, %p35_p0  ;;  %p1815_p6 = por %p42_p4, %p41_p3 }
   0xe   : > { %p91_p7 = scmp.eq.s32.totalorder %s1793_s13, 1  ;;  %p97_p8 = scmp.eq.s32.totalorder %s1270_s14, 1 }
   0xf   : > { %s2866_s20 = scalar_select %p1815_p6, 1, 0 }
  0x10   : > { %p1320_p10 = scmp.lt.s32.totalorder %s1746_s12, 2  ;;  %p1822_p11 = por %p91_p7, %p35_p0 }
  0x11   : > { %p1826_p12 = por %p97_p8, %p41_p3  ;;  %s1831_s23 = sand.u32 1, %s1742_s11  }
  0x12   : > { %s2867_s21 = scalar_select %p1822_p11, 1, 0 }
  0x13   : > { %s2868_s22 = scalar_select %p1826_p12, 1, 0 }
  0x14   : > { %s1298_s24 = sshll.u32 %s1746_s12, 7  ;;  %s1273_s25 = sshll.u32 %s1831_s23, 3 }
  0x15   : > { %s1838_s28 = scalar_lea.hbm %s2835_s0, %s1298_s24  ;;  %s121_s29 = scalar_lea.vmem [#allocation2], %s1273_s25 }
  0x16   : > { %s128_s30 = sshll.u32 %s121_s29, 4  ;;  %p1842_p13 = pnand %p1320_p10, %p1811_p5  ;;  %s1846_s30 = int_to_ptr.vmem [resolvable:$true] %s128_s30 }
  0x17   : > { %s118_s4 = scalar_lea.sflag [#allocation3], %s1831_s23  ;;  %s1616_s5 = scalar_lea.hbm %s1838_s28, 128 }
  0x18   : > { %p1617_p0 = scmp.ne.s32.totalorder %s1838_s28, %s1616_s5  ;;  %p1618_p1 = pneg %p1842_p13 }
  0x19   : > { %s1621_s8 = scalar_lea.hbm %s2835_s0, 256  ;;  %p1622_p4 = scmp.lt.u32.totalorder %s1838_s28, %s2835_s0 }
  0x1a   : > { %p1619_p2 = pnand %p1618_p1, %p1617_p0  ;;  %p1623_p5 = scmp.lt.u32.totalorder %s1621_s8, %s1616_s5 }
  0x1b   : > { %p1625_p8 = scmp.lt.u32.totalorder %s1616_s5, %s1838_s28 }
  0x1c   : > { %p1620_p3 = pneg %p1619_p2  ;;  %p1624_p7 = por %p1623_p5, %p1622_p4 }
  0x1e   : > { %p1626_p10 = por %p1625_p8, %p1624_p7 }
  0x20   : > { %p1627_p9 = pnand %p1626_p10, %p1620_p3 }
  0x22   : > { %1630 = shalt.err (!%p1627_p9)
}
  0x23   : > { %s1631_s17 = scalar_lea.vmem %s1846_s30, 128  ;;  %s1748_s19 = smov [#allocation2]  }
  0x24   : > { %p1632_p0 = scmp.ne.s32.totalorder %s1846_s30, %s1631_s17  ;;  %s1636_s24 = sshll.u32 %s1748_s19, 4  ;;  %s1637_s24 = int_to_ptr.vmem [resolvable:$false] %s1636_s24 }
  0x25   : > { %s1638_s25 = scalar_lea.vmem %s1637_s24, 256  ;;  %p1639_p11 = scmp.lt.s32.totalorder %s1846_s30, %s1637_s24 }
  0x26   : > { %p1634_p2 = pnand %p1632_p0, %p1618_p1  ;;  %p1640_p4 = scmp.lt.s32.totalorder %s1638_s25, %s1631_s17 }
  0x28   : > { %p1635_p12 = pneg %p1634_p2  ;;  %p1641_p5 = por %p1640_p4, %p1639_p11 }
  0x2a   : > { %p1642_p7 = pnand %p1641_p5, %p1635_p12 }
  0x2c   : > { %1645 = shalt.err (!%p1642_p7)
}
  0x2d   : > { %s1749_s26 = smov 16   ;;  %s1750_s27 = smov 1  }
  0x2e   : > { %1312 = dma.hbm_to_vmem [thread:$0]  (!%p1842_p13), %s1838_s28, 128, %s1846_s30, %s118_s4, %s1749_s26, %s1749_s26, %s1750_s27  }
  0x2f   : > { %p1280_p9 = scmp.ge.s32.totalorder %s1746_s12, 1  ;;  %p158_p3 = scmp.lt.s32.totalorder %s1746_s12, 3 }
  0x30   : > { %s1276_s29 = sshll.u32 %s1831_s23, 9  ;;  %s1300_s6 = sshll.u32 %s1746_s12, 13 }
  0x31   : > { %p1879_p11 = pnand %p1280_p9, %p158_p3  ;;  %s142_s7 = scalar_lea.vmem [#allocation5], %s1276_s29 }
  0x32   : > { %s150_s8 = sshll.u32 %s142_s7, 4  ;;  %s1887_s17 = scalar_lea.hbm %s2836_s1, %s1300_s6  ;;  %s1889_s8 = int_to_ptr.vmem [resolvable:$true] %s150_s8 }
  0x33   : > { %s139_s28 = scalar_lea.sflag [#allocation6], %s1831_s23  ;;  %s1646_s30 = scalar_lea.hbm %s1887_s17, 8192 }
  0x34   : > { %p1647_p12 = scmp.ne.s32.totalorder %s1887_s17, %s1646_s30  ;;  %s1651_s24 = scalar_lea.hbm %s2836_s1, 16384 }
  0x35   : > { %p1652_p0 = scmp.lt.u32.totalorder %s1887_s17, %s2836_s1  ;;  %p1653_p2 = scmp.lt.u32.totalorder %s1651_s24, %s1646_s30 }
  0x36   : > { %p1649_p8 = pnand %p1647_p12, %p1618_p1  ;;  %p1655_p5 = scmp.lt.u32.totalorder %s1646_s30, %s1887_s17 }
  0x37   : > { %p1654_p4 = por %p1653_p2, %p1652_p0 }
  0x38   : > { %p1650_p10 = pneg %p1649_p8 }
  0x39   : > { %p1656_p7 = por %p1655_p5, %p1654_p4 }
  0x3b   : > { %p1657_p9 = pnand %p1656_p7, %p1650_p10 }
  0x3d   : > { %1660 = shalt.err (!%p1657_p9)
}
  0x3e   : > { %s1661_s27 = scalar_lea.vmem %s1889_s8, 8192  ;;  %s1751_s29 = smov [#allocation5]  }
  0x3f   : > { %p1662_p3 = scmp.ne.s32.totalorder %s1889_s8, %s1661_s27  ;;  %s1666_s6 = sshll.u32 %s1751_s29, 4  ;;  %s1667_s6 = int_to_ptr.vmem [resolvable:$false] %s1666_s6 }
  0x40   : > { %s1668_s7 = scalar_lea.vmem %s1667_s6, 16384  ;;  %p1669_p6 = scmp.lt.s32.totalorder %s1889_s8, %s1667_s6 }
  0x41   : > { %p1664_p12 = pnand %p1662_p3, %p1618_p1  ;;  %p1670_p0 = scmp.lt.s32.totalorder %s1668_s7, %s1661_s27 }
  0x43   : > { %p1665_p8 = pneg %p1664_p12  ;;  %p1671_p2 = por %p1670_p0, %p1669_p6 }
  0x45   : > { %p1672_p4 = pnand %p1671_p2, %p1665_p8 }
  0x47   : > { %1675 = shalt.err (!%p1672_p4)
}
  0x48   : > { %s1752_s14 = smov 128   ;;  %s1753_s16 = smov 8  }
  0x49   : > { %1315 = dma.hbm_to_vmem [thread:$0]  (!%p1842_p13), %s1887_s17, 8192, %s1889_s8, %s139_s28, %s1752_s14, %s1752_s14, %s1753_s16  }
  0x4a   : > { %162 = sbr.rel (%p1879_p11) target bundleno = 548 (0x224), region = 28 }
  0x51   : > { %s1920_s30 = sand.u32 1, %s1738_s10   ;;  %p2871_p6 = scmp.ne.s32.totalorder %s2866_s20, 0 }
  0x52   : > { %s1281_s4 = sshll.u32 %s1920_s30, 3  ;;  %s165_s19 = scalar_lea.sflag [#allocation3], %s1920_s30 }
  0x53   : > { %s1924_s24 = scalar_lea.vmem [#allocation2], %s1281_s4 }
  0x54   : > { %1721 = dma.done.wait (%p2871_p6), %s165_s19, 128  }
  0x55   : > { %1723 = vsyncadd (%p2871_p6), %s165_s19, 4294967168  ;;  %s1282_s23 = sshll.u32 %s1920_s30, 9  ;;  %s174_s3 = scalar_lea.sflag [#allocation6], %s1920_s30 }
  0x56   : > { %s1934_s5 = scalar_lea.vmem [#allocation5], %s1282_s23 }
  0x57   : > { %1725 = dma.done.wait (%p2871_p6), %s174_s3, 8192  }
  0x58   : > { %1727 = vsyncadd (%p2871_p6), %s174_s3, 4294959104  ;;  %v1284_v0 = vld [vmem:[%s1924_s24] ss:$0 sm:$0xff]  ;;  %v214_v1 = vld [vmem:[%s1934_s5] sm:$0xff]  ;;  %vm390_vm0 = vcmask 523264   ;;  %s2591_s20 = scalar_lea.vmem [#allocation7], %s1282_s23 }
  0x59   : > { %v216_v2 = vld [vmem:[%s1934_s5 + $0x10] sm:$0xff]  ;;  %v1943_v3 = vadd.f32 %v1284_v0, %v214_v1  ;;  %v215_v5 = vld [vmem:[%s1934_s5 + $0x8] sm:$0xff]  ;;  %v217_v6 = vld [vmem:[%s1934_s5 + $0x18] sm:$0xff]  ;;  %s1302_s8 = sshll.u32 %s1793_s13, 13  ;;  %s1174_s17 = sshll.u32 %s2591_s20, 4  ;;  %s2788_s17 = int_to_ptr.vmem [resolvable:$true] %s1174_s17 }
  0x5a   : > { %v1945_v4 = vadd.f32 %v1284_v0, %v216_v2  ;;  %v1949_v7 = vadd.f32 %v1284_v0, %v215_v5  ;;  %v1951_v8 = vadd.f32 %v1284_v0, %v217_v6  ;;  %v218_v9 = vld [vmem:[%s1934_s5 + $0x20] sm:$0xff]  ;;  %v219_v10 = vld [vmem:[%s1934_s5 + $0x28] sm:$0xff]  ;;  %v220_v17 = vld [vmem:[%s1934_s5 + $0x30] sm:$0xff]  ;;  %s2786_s26 = scalar_lea.hbm %s2837_s2, %s1302_s8  ;;  %s1160_s13 = scalar_lea.sflag [#allocation4], %s1920_s30 }
  0x5b   : > { %v391_v11 = vsel %vm390_vm0, %v1943_v3, -inf  ;;  %v1963_v15 = vadd.f32 %v1284_v0, %v218_v9  ;;  %v1965_v16 = vadd.f32 %v1284_v0, %v219_v10  ;;  %v221_v18 = vld [vmem:[%s1934_s5 + $0x38] sm:$0xff]  ;;  %v1973_v21 = vadd.f32 %v1284_v0, %v220_v17  ;;  %v222_v24 = vld [vmem:[%s1934_s5 + $0x40] sm:$0xff]  ;;  %v223_v25 = vld [vmem:[%s1934_s5 + $0x48] sm:$0xff]  ;;  %s1676_s27 = scalar_lea.vmem %s2788_s17, 8192  ;;  %p2922_p1 = scmp.ne.s32.totalorder %s2867_s21, 0 }
  0x5c   : > { %v397_v12 = vsel %vm390_vm0, %v1945_v4, -inf  ;;  %392 = vmax.xlane.f32.xlu0 %v391_v11  ;;  %v394_v13 = vsel %vm390_vm0, %v1949_v7, -inf  ;;  %v400_v14 = vsel %vm390_vm0, %v1951_v8, -inf  ;;  %v1975_v22 = vadd.f32 %v1284_v0, %v221_v18  ;;  %v1285_v23 = vld [vmem:[%s1924_s24 + $0x1] ss:$0 sm:$0xff]  ;;  %v226_v36 = vld [vmem:[%s1934_s5 + $0x60] sm:$0xff]  ;;  %p1677_p13 = scmp.ne.s32.totalorder %s2788_s17, %s1676_s27 }
  0x5d   : > { %398 = vmax.xlane.f32.xlu1 %v397_v12  ;;  %v403_v19 = vsel %vm390_vm0, %v1963_v15, -inf  ;;  %v406_v20 = vsel %vm390_vm0, %v1965_v16, -inf  ;;  %v409_v26 = vsel %vm390_vm0, %v1973_v21, -inf  ;;  %v1984_v28 = vadd.f32 %v1285_v23, %v222_v24  ;;  %v224_v30 = vld [vmem:[%s1934_s5 + $0x50] sm:$0xff]  ;;  %v225_v31 = vld [vmem:[%s1934_s5 + $0x58] sm:$0xff]  ;;  %v227_v37 = vld [vmem:[%s1934_s5 + $0x68] sm:$0xff] }
  0x5e   : > { %v412_v27 = vsel %vm390_vm0, %v1975_v22, -inf  ;;  %v1986_v29 = vadd.f32 %v1285_v23, %v223_v25  ;;  %v1994_v34 = vadd.f32 %v1285_v23, %v224_v30  ;;  %v1996_v35 = vadd.f32 %v1285_v23, %v225_v31  ;;  %v228_v42 = vld [vmem:[%s1934_s5 + $0x70] sm:$0xff]  ;;  %v229_v43 = vld [vmem:[%s1934_s5 + $0x78] sm:$0xff]  ;;  %v230_v49 = vld [vmem:[%s1934_s5 + $0x80] sm:$0xff]  ;;  %p1678_p11 = pnand %p1677_p13, %p2922_p1  ;;  %s1754_s29 = smov [#allocation7]  }
  0x5f   : > { %v415_v32 = vsel %vm390_vm0, %v1984_v28, -inf  ;;  %v2004_v40 = vadd.f32 %v1285_v23, %v226_v36  ;;  %v2006_v41 = vadd.f32 %v1285_v23, %v227_v37  ;;  %v2014_v46 = vadd.f32 %v1285_v23, %v228_v42  ;;  %v1286_v48 = vld [vmem:[%s1924_s24 + $0x2] ss:$0 sm:$0xff]  ;;  %v231_v50 = vld [vmem:[%s1934_s5 + $0x88] sm:$0xff]  ;;  %v234_v61 = vld [vmem:[%s1934_s5 + $0xa0] sm:$0xff]  ;;  %s1680_s6 = sshll.u32 %s1754_s29, 4  ;;  %s1681_s6 = int_to_ptr.vmem [resolvable:$false] %s1680_s6 }
  0x60   : > { %395 = vmax.xlane.f32.xlu0 %v394_v13  ;;  %v418_v33 = vsel %vm390_vm0, %v1986_v29, -inf  ;;  %v421_v38 = vsel %vm390_vm0, %v1994_v34, -inf  ;;  %v424_v39 = vsel %vm390_vm0, %v1996_v35, -inf  ;;  %v2016_v47 = vadd.f32 %v1285_v23, %v229_v43  ;;  %v232_v55 = vld [vmem:[%s1934_s5 + $0x90] sm:$0xff]  ;;  %v233_v56 = vld [vmem:[%s1934_s5 + $0x98] sm:$0xff]  ;;  %v235_v62 = vld [vmem:[%s1934_s5 + $0xa8] sm:$0xff]  ;;  %p1679_p10 = pneg %p1678_p11  ;;  %p1683_p5 = scmp.lt.s32.totalorder %s2788_s17, %s1681_s6 }
  0x61   : > { %401 = vmax.xlane.f32.xlu1 %v400_v14  ;;  %v427_v44 = vsel %vm390_vm0, %v2004_v40, -inf  ;;  %v430_v45 = vsel %vm390_vm0, %v2006_v41, -inf  ;;  %v433_v51 = vsel %vm390_vm0, %v2014_v46, -inf  ;;  %v2025_v53 = vadd.f32 %v1286_v48, %v230_v49  ;;  %v236_v5 = vld [vmem:[%s1934_s5 + $0xb0] sm:$0xff]  ;;  %v237_v6 = vld [vmem:[%s1934_s5 + $0xb8] sm:$0xff]  ;;  %v238_v14 = vld [vmem:[%s1934_s5 + $0xc0] sm:$0xff] }
  0x62   : > { %v436_v52 = vsel %vm390_vm0, %v2016_v47, -inf  ;;  %v2027_v54 = vadd.f32 %v1286_v48, %v231_v50  ;;  %v2035_v59 = vadd.f32 %v1286_v48, %v232_v55  ;;  %v2037_v60 = vadd.f32 %v1286_v48, %v233_v56  ;;  %v1287_v13 = vld [vmem:[%s1924_s24 + $0x3] ss:$0 sm:$0xff]  ;;  %v239_v17 = vld [vmem:[%s1934_s5 + $0xc8] sm:$0xff]  ;;  %v1288_v50 = vld [vmem:[%s1924_s24 + $0x4] ss:$0 sm:$0xff] }
  0x63   : > { %v439_v57 = vsel %vm390_vm0, %v2025_v53, -inf  ;;  %v2045_v1 = vadd.f32 %v1286_v48, %v234_v61  ;;  %v2047_v2 = vadd.f32 %v1286_v48, %v235_v62  ;;  %v2055_v11 = vadd.f32 %v1286_v48, %v236_v5  ;;  %v240_v24 = vld [vmem:[%s1934_s5 + $0xd0] sm:$0xff]  ;;  %v241_v25 = vld [vmem:[%s1934_s5 + $0xd8] sm:$0xff]  ;;  %s1682_s7 = scalar_lea.vmem %s1681_s6, 16384 }
  0x64   : > { %404 = vmax.xlane.f32.xlu0 %v403_v19  ;;  %v442_v58 = vsel %vm390_vm0, %v2027_v54, -inf  ;;  %v445_v63 = vsel %vm390_vm0, %v2035_v59, -inf  ;;  %v448_v0 = vsel %vm390_vm0, %v2037_v60, -inf  ;;  %v2057_v12 = vadd.f32 %v1286_v48, %v237_v6  ;;  %v244_v42 = vld [vmem:[%s1934_s5 + $0xf0] sm:$0xff]  ;;  %v245_v43 = vld [vmem:[%s1934_s5 + $0xf8] sm:$0xff]  ;;  %p1684_p7 = scmp.lt.s32.totalorder %s1682_s7, %s1676_s27 }
  0x65   : > { %407 = vmax.xlane.f32.xlu1 %v406_v20  ;;  %v451_v9 = vsel %vm390_vm0, %v2045_v1, -inf  ;;  %v454_v10 = vsel %vm390_vm0, %v2047_v2, -inf  ;;  %v457_v18 = vsel %vm390_vm0, %v2055_v11, -inf  ;;  %v2066_v20 = vadd.f32 %v1287_v13, %v238_v14  ;;  %v248_v61 = vld [vmem:[%s1934_s5 + $0x110] sm:$0xff]  ;;  %v249_v62 = vld [vmem:[%s1934_s5 + $0x118] sm:$0xff] }
  0x66   : > { %v460_v19 = vsel %vm390_vm0, %v2057_v12, -inf  ;;  %v2068_v23 = vadd.f32 %v1287_v13, %v239_v17  ;;  %v2076_v30 = vadd.f32 %v1287_v13, %v240_v24  ;;  %v2078_v31 = vadd.f32 %v1287_v13, %v241_v25  ;;  %v253_v24 = vld [vmem:[%s1934_s5 + $0x138] sm:$0xff]  ;;  %p1685_p9 = por %p1684_p7, %p1683_p5 }
  0x67   : > { %v2096_v48 = vadd.f32 %v1287_v13, %v244_v42  ;;  %v2098_v49 = vadd.f32 %v1287_v13, %v245_v43  ;;  %v2117_v5 = vadd.f32 %v1288_v50, %v248_v61  ;;  %v2119_v6 = vadd.f32 %v1288_v50, %v249_v62  ;;  %v258_v62 = vld [vmem:[%s1934_s5 + $0x160] sm:$0xff] }
  0x68   : > { %410 = vmax.xlane.f32.xlu0 %v409_v26  ;;  %v463_v26 = vsel %vm390_vm0, %v2066_v20, -inf  ;;  %v469_v36 = vsel %vm390_vm0, %v2076_v30, -inf  ;;  %v472_v37 = vsel %vm390_vm0, %v2078_v31, -inf  ;;  %p1686_p3 = pnand %p1685_p9, %p1679_p10 }
  0x69   : > { %413 = vmax.xlane.f32.xlu1 %v412_v27  ;;  %v466_v27 = vsel %vm390_vm0, %v2068_v23, -inf  ;;  %v481_v55 = vsel %vm390_vm0, %v2096_v48, -inf  ;;  %v484_v56 = vsel %vm390_vm0, %v2098_v49, -inf  ;;  %v496_v14 = vsel %vm390_vm0, %v2119_v6, -inf }
  0x6c   : > { %416 = vmax.xlane.f32.xlu0 %v415_v32  ;;  %v242_v32 = vld [vmem:[%s1934_s5 + $0xe0] sm:$0xff] }
  0x6d   : > { %419 = vmax.xlane.f32.xlu1 %v418_v33  ;;  %v243_v33 = vld [vmem:[%s1934_s5 + $0xe8] sm:$0xff] }
  0x70   : > { %422 = vmax.xlane.f32.xlu0 %v421_v38  ;;  %v2086_v38 = vadd.f32 %v1287_v13, %v242_v32  ;;  %v2139_v32 = vadd.f32 %v1288_v50, %v253_v24 }
  0x71   : > { %425 = vmax.xlane.f32.xlu1 %v424_v39  ;;  %v2088_v39 = vadd.f32 %v1287_v13, %v243_v33  ;;  %v493_v13 = vsel %vm390_vm0, %v2117_v5, -inf  ;;  %v1289_v33 = vld [vmem:[%s1924_s24 + $0x5] ss:$0 sm:$0xff] }
  0x72   : > { %v508_v43 = vsel %vm390_vm0, %v2139_v32, -inf }
  0x74   : > { %428 = vmax.xlane.f32.xlu0 %v427_v44  ;;  %v475_v44 = vsel %vm390_vm0, %v2086_v38, -inf }
  0x75   : > { %431 = vmax.xlane.f32.xlu1 %v430_v45  ;;  %v478_v45 = vsel %vm390_vm0, %v2088_v39, -inf }
  0x78   : > { %434 = vmax.xlane.f32.xlu0 %v433_v51  ;;  %v246_v51 = vld [vmem:[%s1934_s5 + $0x100] sm:$0xff] }
  0x79   : > { %437 = vmax.xlane.f32.xlu1 %v436_v52  ;;  %v247_v52 = vld [vmem:[%s1934_s5 + $0x108] sm:$0xff] }
  0x7c   : > { %440 = vmax.xlane.f32.xlu0 %v439_v57  ;;  %v2107_v57 = vadd.f32 %v1288_v50, %v246_v51  ;;  %v256_v51 = vld [vmem:[%s1934_s5 + $0x150] sm:$0xff] }
  0x7d   : > { %443 = vmax.xlane.f32.xlu1 %v442_v58  ;;  %v2109_v58 = vadd.f32 %v1288_v50, %v247_v52 }
  0x80   : > { %446 = vmax.xlane.f32.xlu0 %v445_v63  ;;  %v487_v63 = vsel %vm390_vm0, %v2107_v57, -inf }
  0x81   : > { %449 = vmax.xlane.f32.xlu1 %v448_v0  ;;  %v490_v0 = vsel %vm390_vm0, %v2109_v58, -inf }
  0x84   : > { %452 = vmax.xlane.f32.xlu0 %v451_v9  ;;  %v250_v9 = vld [vmem:[%s1934_s5 + $0x120] sm:$0xff] }
  0x85   : > { %455 = vmax.xlane.f32.xlu1 %v454_v10  ;;  %v251_v10 = vld [vmem:[%s1934_s5 + $0x128] sm:$0xff]  ;;  %v2127_v17 = vadd.f32 %v1288_v50, %v250_v9 }
  0x87   : > { %v499_v25 = vsel %vm390_vm0, %v2127_v17, -inf }
  0x88   : > { %458 = vmax.xlane.f32.xlu0 %v457_v18  ;;  %v2129_v18 = vadd.f32 %v1288_v50, %v251_v10  ;;  %v2168_v10 = vadd.f32 %v1289_v33, %v258_v62  ;;  %v264_v62 = vld [vmem:[%s1934_s5 + $0x190] sm:$0xff] }
  0x89   : > { %461 = vmax.xlane.f32.xlu1 %v460_v19  ;;  %v252_v19 = vld [vmem:[%s1934_s5 + $0x130] sm:$0xff] }
  0x8a   : > { %v523_v24 = vsel %vm390_vm0, %v2168_v10, -inf }
  0x8c   : > { %464 = vmax.xlane.f32.xlu0 %v463_v26  ;;  %v502_v26 = vsel %vm390_vm0, %v2129_v18, -inf }
  0x8d   : > { %467 = vmax.xlane.f32.xlu1 %v466_v27  ;;  %v2137_v27 = vadd.f32 %v1288_v50, %v252_v19  ;;  %v257_v50 = vld [vmem:[%s1934_s5 + $0x158] sm:$0xff] }
  0x8e   : > { %v2160_v61 = vadd.f32 %v1289_v33, %v257_v50  ;;  %v261_v19 = vld [vmem:[%s1934_s5 + $0x178] sm:$0xff] }
  0x8f   : > { %v505_v42 = vsel %vm390_vm0, %v2137_v27, -inf }
  0x90   : > { %470 = vmax.xlane.f32.xlu0 %v469_v36  ;;  %v254_v36 = vld [vmem:[%s1934_s5 + $0x140] sm:$0xff]  ;;  %v520_v9 = vsel %vm390_vm0, %v2160_v61, -inf }
  0x91   : > { %473 = vmax.xlane.f32.xlu1 %v472_v37  ;;  %v255_v37 = vld [vmem:[%s1934_s5 + $0x148] sm:$0xff] }
  0x94   : > { %476 = vmax.xlane.f32.xlu0 %v475_v44  ;;  %v2148_v44 = vadd.f32 %v1289_v33, %v254_v36  ;;  %v2180_v36 = vadd.f32 %v1289_v33, %v261_v19  ;;  %v266_v19 = vld [vmem:[%s1934_s5 + $0x1a0] sm:$0xff] }
  0x95   : > { %479 = vmax.xlane.f32.xlu1 %v478_v45  ;;  %v2150_v45 = vadd.f32 %v1289_v33, %v255_v37  ;;  %v1290_v37 = vld [vmem:[%s1924_s24 + $0x6] ss:$0 sm:$0xff] }
  0x96   : > { %v511_v52 = vsel %vm390_vm0, %v2148_v44, -inf  ;;  %v532_v50 = vsel %vm390_vm0, %v2180_v36, -inf }
  0x98   : > { %482 = vmax.xlane.f32.xlu0 %v481_v55  ;;  %v514_v55 = vsel %vm390_vm0, %v2150_v45, -inf }
  0x99   : > { %485 = vmax.xlane.f32.xlu1 %v484_v56  ;;  %v2158_v56 = vadd.f32 %v1289_v33, %v256_v51 }
  0x9c   : > { %488 = vmax.xlane.f32.xlu0 %v487_v63  ;;  %v259_v63 = vld [vmem:[%s1934_s5 + $0x168] sm:$0xff] }
  0x9d   : > { %491 = vmax.xlane.f32.xlu1 %v490_v0  ;;  %v517_v0 = vsel %vm390_vm0, %v2158_v56, -inf }
  0xa0   : > { %494 = vmax.xlane.f32.xlu0 %v493_v13  ;;  %v2170_v13 = vadd.f32 %v1289_v33, %v259_v63 }
  0xa1   : > { %497 = vmax.xlane.f32.xlu1 %v496_v14  ;;  %v260_v14 = vld [vmem:[%s1934_s5 + $0x170] sm:$0xff] }
  0xa4   : > { %500 = vmax.xlane.f32.xlu0 %v499_v25  ;;  %v526_v25 = vsel %vm390_vm0, %v2170_v13, -inf }
  0xa5   : > { %503 = vmax.xlane.f32.xlu1 %v502_v26  ;;  %v2178_v26 = vadd.f32 %v1289_v33, %v260_v14  ;;  %v265_v33 = vld [vmem:[%s1934_s5 + $0x198] sm:$0xff] }
  0xa6   : > { %v2201_v14 = vadd.f32 %v1290_v37, %v265_v33 }
  0xa7   : > { %v529_v51 = vsel %vm390_vm0, %v2178_v26, -inf }
  0xa8   : > { %506 = vmax.xlane.f32.xlu0 %v505_v42  ;;  %v262_v42 = vld [vmem:[%s1934_s5 + $0x180] sm:$0xff]  ;;  %2874 = vst [vmem:[#allocation13_spill] sm:$0xff] %v2201_v14 }
  0xa9   : > { %509 = vmax.xlane.f32.xlu1 %v508_v43  ;;  %v263_v43 = vld [vmem:[%s1934_s5 + $0x188] sm:$0xff] }
  0xac   : > { %512 = vmax.xlane.f32.xlu0 %v511_v52  ;;  %v2189_v52 = vadd.f32 %v1290_v37, %v262_v42  ;;  %v544_v42 = vsel %vm390_vm0, %v2201_v14, -inf  ;;  %v270_v14 = vld [vmem:[%s1934_s5 + $0x1c0] sm:$0xff] }
  0xad   : > { %515 = vmax.xlane.f32.xlu1 %v514_v55  ;;  %v2191_v55 = vadd.f32 %v1290_v37, %v263_v43  ;;  %v2209_v43 = vadd.f32 %v1290_v37, %v266_v19  ;;  %v1291_v19 = vld [vmem:[%s1924_s24 + $0x7] ss:$0 sm:$0xff] }
  0xae   : > { %v535_v63 = vsel %vm390_vm0, %v2189_v52, -inf }
  0xaf   : > { %2872 = vst [vmem:[#allocation11_spill] sm:$0xff] %v2191_v55  ;;  %2875 = vst [vmem:[#allocation14_spill] sm:$0xff] %v2209_v43  ;;  %v547_v33 = vsel %vm390_vm0, %v2209_v43, -inf  ;;  %v2230_v43 = vadd.f32 %v1291_v19, %v270_v14  ;;  %v274_v14 = vld [vmem:[%s1934_s5 + $0x1e0] sm:$0xff] }
  0xb0   : > { %518 = vmax.xlane.f32.xlu0 %v517_v0  ;;  %v538_v0 = vsel %vm390_vm0, %v2191_v55, -inf  ;;  %v276_v55 = vld [vmem:[%s1934_s5 + $0x1f0] sm:$0xff] }
  0xb1   : > { %521 = vmax.xlane.f32.xlu1 %v520_v9  ;;  %v2199_v9 = vadd.f32 %v1290_v37, %v264_v62  ;;  %v269_v62 = vld [vmem:[%s1934_s5 + $0x1b8] sm:$0xff]  ;;  %2879 = vst [vmem:[#allocation18_spill] sm:$0xff] %v2230_v43 }
  0xb3   : > { %2873 = vst [vmem:[#allocation12_spill] sm:$0xff] %v2199_v9 }
  0xb4   : > { %524 = vmax.xlane.f32.xlu0 %v523_v24  ;;  %v267_v24 = vld [vmem:[%s1934_s5 + $0x1a8] sm:$0xff] }
  0xb5   : > { %527 = vmax.xlane.f32.xlu1 %v526_v25  ;;  %v541_v25 = vsel %vm390_vm0, %v2199_v9, -inf  ;;  %v2221_v9 = vadd.f32 %v1290_v37, %v269_v62  ;;  %v559_v62 = vsel %vm390_vm0, %v2230_v43, -inf }
  0xb7   : > { %2878 = vst [vmem:[#allocation17_spill] sm:$0xff] %v2221_v9 }
  0xb8   : > { %530 = vmax.xlane.f32.xlu0 %v529_v51  ;;  %v2211_v51 = vadd.f32 %v1290_v37, %v267_v24  ;;  %v271_v24 = vld [vmem:[%s1934_s5 + $0x1c8] sm:$0xff] }
  0xb9   : > { %533 = vmax.xlane.f32.xlu1 %v532_v50  ;;  %v268_v50 = vld [vmem:[%s1934_s5 + $0x1b0] sm:$0xff] }
  0xba   : > { %2876 = vst [vmem:[#allocation15_spill] sm:$0xff] %v2211_v51 }
  0xbc   : > { %536 = vmax.xlane.f32.xlu0 %v535_v63  ;;  %v550_v63 = vsel %vm390_vm0, %v2211_v51, -inf  ;;  %v2232_v51 = vadd.f32 %v1291_v19, %v271_v24 }
  0xbd   : > { %539 = vmax.xlane.f32.xlu1 %v538_v0  ;;  %v2219_v0 = vadd.f32 %v1290_v37, %v268_v50  ;;  %v272_v50 = vld [vmem:[%s1934_s5 + $0x1d0] sm:$0xff]  ;;  %v273_v37 = vld [vmem:[%s1934_s5 + $0x1d8] sm:$0xff] }
  0xbe   : > { %2880 = vst [vmem:[#allocation19_spill] sm:$0xff] %v2232_v51 }
  0xbf   : > { %2877 = vst [vmem:[#allocation16_spill] sm:$0xff] %v2219_v0 }
  0xc0   : > { %542 = vmax.xlane.f32.xlu0 %v541_v25  ;;  %v553_v25 = vsel %vm390_vm0, %v2219_v0, -inf  ;;  %v2242_v0 = vadd.f32 %v1291_v19, %v273_v37 }
  0xc1   : > { %545 = vmax.xlane.f32.xlu1 %v544_v42  ;;  %v556_v42 = vsel %vm390_vm0, %v2221_v9, -inf  ;;  %v275_v9 = vld [vmem:[%s1934_s5 + $0x1e8] sm:$0xff] }
  0xc2   : > { %2882 = vst [vmem:[#allocation21_spill] sm:$0xff] %v2242_v0  ;;  %v2252_v43 = vadd.f32 %v1291_v19, %v275_v9 }
  0xc4   : > { %548 = vmax.xlane.f32.xlu0 %v547_v33  ;;  %v562_v33 = vsel %vm390_vm0, %v2232_v51, -inf  ;;  %2884 = vst [vmem:[#allocation23_spill] sm:$0xff] %v2252_v43  ;;  %v277_v51 = vld [vmem:[%s1934_s5 + $0x1f8] sm:$0xff]  ;;  %v574_v37 = vsel %vm390_vm0, %v2252_v43, -inf }
  0xc5   : > { %551 = vmax.xlane.f32.xlu1 %v550_v63  ;;  %v2240_v63 = vadd.f32 %v1291_v19, %v272_v50 }
  0xc7   : > { %2881 = vst [vmem:[#allocation20_spill] sm:$0xff] %v2240_v63  ;;  %v565_v24 = vsel %vm390_vm0, %v2240_v63, -inf }
  0xc8   : > { %554 = vmax.xlane.f32.xlu0 %v553_v25  ;;  %v568_v25 = vsel %vm390_vm0, %v2242_v0, -inf }
  0xc9   : > { %557 = vmax.xlane.f32.xlu1 %v556_v42  ;;  %v2250_v42 = vadd.f32 %v1291_v19, %v274_v14 }
  0xcb   : > { %2883 = vst [vmem:[#allocation22_spill] sm:$0xff] %v2250_v42  ;;  %v571_v50 = vsel %vm390_vm0, %v2250_v42, -inf }
  0xcc   : > { %560 = vmax.xlane.f32.xlu0 %v559_v62  ;;  %v2260_v62 = vadd.f32 %v1291_v19, %v276_v55 }
  0xcd   : > { %563 = vmax.xlane.f32.xlu1 %v562_v33  ;;  %v2262_v33 = vadd.f32 %v1291_v19, %v277_v51 }
  0xce   : > { %2885 = vst [vmem:[#allocation24_spill] sm:$0xff] %v2260_v62  ;;  %v577_v9 = vsel %vm390_vm0, %v2260_v62, -inf }
  0xcf   : > { %2886 = vst [vmem:[#allocation25_spill] sm:$0xff] %v2262_v33  ;;  %v580_v14 = vsel %vm390_vm0, %v2262_v33, -inf }
  0xd0   : > { %566 = vmax.xlane.f32.xlu0 %v565_v24 }
  0xd1   : > { %569 = vmax.xlane.f32.xlu1 %v568_v25 }
  0xd4   : > { %572 = vmax.xlane.f32.xlu0 %v571_v50 }
  0xd5   : > { %575 = vmax.xlane.f32.xlu1 %v574_v37 }
  0xd8   : > { %578 = vmax.xlane.f32.xlu0 %v577_v9 }
  0xd9   : > { %581 = vmax.xlane.f32.xlu1 %v580_v14 }
  0xe9   : > { %v393_v24 = vpop.xlane.xlu0 %392 }
  0xea   : > { %v399_v25 = vpop.xlane.xlu1 %398  ;;  %v583_v42 = vsub.f32 %v1943_v3, %v393_v24 }
  0xeb   : > { %v585_v43 = vsub.f32 %v1945_v4, %v399_v25 }
  0xec   : > { %v647_v55 = vmul.f32 1.442695, %v583_v42 }
  0xed   : > { %v651_v0 = vmul.f32 1.442695, %v585_v43  ;;  %v396_v51 = vpop.xlane.xlu0 %395 }
  0xee   : > { %v402_v19 = vpop.xlane.xlu1 %401  ;;  %1360 = vpow2.f32 %v647_v55  ;;  %v584_v50 = vsub.f32 %v1949_v7, %v396_v51 }
  0xef   : > { %v586_v37 = vsub.f32 %v1951_v8, %v402_v19  ;;  %1362 = vpow2.f32 %v651_v0 }
  0xf0   : > { %v649_v62 = vmul.f32 1.442695, %v584_v50 }
  0xf1   : > { %v653_v33 = vmul.f32 1.442695, %v586_v37  ;;  %v405_v9 = vpop.xlane.xlu0 %404 }
  0xf2   : > { %v408_v14 = vpop.xlane.xlu1 %407  ;;  %1364 = vpow2.f32 %v649_v62  ;;  %v587_v63 = vsub.f32 %v1963_v15, %v405_v9 }
  0xf3   : > { %v588_v3 = vsub.f32 %v1965_v16, %v408_v14  ;;  %1366 = vpow2.f32 %v653_v33 }
  0xf4   : > { %v655_v4 = vmul.f32 1.442695, %v587_v63 }
  0xf5   : > { %v657_v43 = vmul.f32 1.442695, %v588_v3  ;;  %v411_v42 = vpop.xlane.xlu0 %410 }
  0xf6   : > { %v414_v24 = vpop.xlane.xlu1 %413  ;;  %1368 = vpow2.f32 %v655_v4  ;;  %v589_v7 = vsub.f32 %v1973_v21, %v411_v42 }
  0xf7   : > { %v590_v8 = vsub.f32 %v1975_v22, %v414_v24  ;;  %1370 = vpow2.f32 %v657_v43 }
  0xf8   : > { %v2276_v0 = vpop.eup %1360  ;;  %v659_v25 = vmul.f32 1.442695, %v589_v7 }
  0xf9   : > { %v661_v55 = vmul.f32 1.442695, %v590_v8  ;;  %v2278_v62 = vpop.eup %1362  ;;  %v417_v15 = vpop.xlane.xlu0 %416  ;;  %v775_v16 = vsel %vm390_vm0, %v2276_v0, 0.0 }
  0xfa   : > { %v420_v63 = vpop.xlane.xlu1 %419  ;;  %1372 = vpow2.f32 %v659_v25  ;;  %v591_v33 = vsub.f32 %v1984_v28, %v417_v15  ;;  %776 = vadd.xlane.f32.xlu0 %v775_v16  ;;  %v781_v22 = vsel %vm390_vm0, %v2278_v62, 0.0 }
  0xfb   : > { %v592_v21 = vsub.f32 %v1986_v29, %v420_v63  ;;  %1374 = vpow2.f32 %v661_v55 }
  0xfc   : > { %v2286_v51 = vpop.eup %1364  ;;  %v663_v19 = vmul.f32 1.442695, %v591_v33 }
  0xfd   : > { %v665_v50 = vmul.f32 1.442695, %v592_v21  ;;  %v2288_v37 = vpop.eup %1366  ;;  %v423_v9 = vpop.xlane.xlu0 %422  ;;  %v778_v14 = vsel %vm390_vm0, %v2286_v51, 0.0 }
  0xfe   : > { %v426_v3 = vpop.xlane.xlu1 %425  ;;  %1376 = vpow2.f32 %v663_v19  ;;  %v593_v28 = vsub.f32 %v1994_v34, %v423_v9  ;;  %782 = vadd.xlane.f32.xlu0 %v781_v22  ;;  %779 = vadd.xlane.f32.xlu1 %v778_v14  ;;  %v784_v4 = vsel %vm390_vm0, %v2288_v37, 0.0 }
  0xff   : > { %v594_v29 = vsub.f32 %v1996_v35, %v426_v3  ;;  %1378 = vpow2.f32 %v665_v50 }
 0x100   : > { %v2296_v43 = vpop.eup %1368  ;;  %v667_v42 = vmul.f32 1.442695, %v593_v28 }
 0x101   : > { %v669_v24 = vmul.f32 1.442695, %v594_v29  ;;  %v2298_v7 = vpop.eup %1370  ;;  %v429_v8 = vpop.xlane.xlu0 %428  ;;  %v787_v25 = vsel %vm390_vm0, %v2296_v43, 0.0 }
 0x102   : > { %v432_v55 = vpop.xlane.xlu1 %431  ;;  %1380 = vpow2.f32 %v667_v42  ;;  %v595_v34 = vsub.f32 %v2004_v40, %v429_v8  ;;  %785 = vadd.xlane.f32.xlu1 %v784_v4  ;;  %788 = vadd.xlane.f32.xlu0 %v787_v25  ;;  %v790_v15 = vsel %vm390_vm0, %v2298_v7, 0.0 }
 0x103   : > { %v596_v35 = vsub.f32 %v2006_v41, %v432_v55  ;;  %1382 = vpow2.f32 %v669_v24 }
 0x104   : > { %v2306_v16 = vpop.eup %1372  ;;  %v671_v63 = vmul.f32 1.442695, %v595_v34 }
 0x105   : > { %v673_v33 = vmul.f32 1.442695, %v596_v35  ;;  %v2308_v21 = vpop.eup %1374  ;;  %v435_v22 = vpop.xlane.xlu0 %434  ;;  %v793_v19 = vsel %vm390_vm0, %v2306_v16, 0.0 }
 0x106   : > { %v438_v50 = vpop.xlane.xlu1 %437  ;;  %1384 = vpow2.f32 %v671_v63  ;;  %v597_v40 = vsub.f32 %v2014_v46, %v435_v22  ;;  %791 = vadd.xlane.f32.xlu1 %v790_v15  ;;  %794 = vadd.xlane.f32.xlu0 %v793_v19  ;;  %v796_v9 = vsel %vm390_vm0, %v2308_v21, 0.0 }
 0x107   : > { %v598_v41 = vsub.f32 %v2016_v47, %v438_v50  ;;  %1386 = vpow2.f32 %v673_v33 }
 0x108   : > { %v2316_v14 = vpop.eup %1376  ;;  %v675_v3 = vmul.f32 1.442695, %v597_v40 }
 0x109   : > { %v677_v28 = vmul.f32 1.442695, %v598_v41  ;;  %v2318_v29 = vpop.eup %1378  ;;  %v441_v4 = vpop.xlane.xlu0 %440  ;;  %v799_v42 = vsel %vm390_vm0, %v2316_v14, 0.0 }
 0x10a   : > { %v444_v24 = vpop.xlane.xlu1 %443  ;;  %1388 = vpow2.f32 %v675_v3  ;;  %v599_v46 = vsub.f32 %v2025_v53, %v441_v4  ;;  %797 = vadd.xlane.f32.xlu1 %v796_v9  ;;  %800 = vadd.xlane.f32.xlu0 %v799_v42  ;;  %v802_v8 = vsel %vm390_vm0, %v2318_v29, 0.0 }
 0x10b   : > { %v600_v47 = vsub.f32 %v2027_v54, %v444_v24  ;;  %1390 = vpow2.f32 %v677_v28 }
 0x10c   : > { %v2326_v25 = vpop.eup %1380  ;;  %v679_v55 = vmul.f32 1.442695, %v599_v46 }
 0x10d   : > { %v681_v34 = vmul.f32 1.442695, %v600_v47  ;;  %v2328_v35 = vpop.eup %1382  ;;  %v447_v15 = vpop.xlane.xlu0 %446  ;;  %v805_v63 = vsel %vm390_vm0, %v2326_v25, 0.0 }
 0x10e   : > { %v450_v33 = vpop.xlane.xlu1 %449  ;;  %1392 = vpow2.f32 %v679_v55  ;;  %v601_v53 = vsub.f32 %v2035_v59, %v447_v15  ;;  %803 = vadd.xlane.f32.xlu1 %v802_v8  ;;  %806 = vadd.xlane.f32.xlu0 %v805_v63  ;;  %v808_v22 = vsel %vm390_vm0, %v2328_v35, 0.0 }
 0x10f   : > { %v602_v54 = vsub.f32 %v2037_v60, %v450_v33  ;;  %1394 = vpow2.f32 %v681_v34 }
 0x110   : > { %v2336_v19 = vpop.eup %1384  ;;  %v683_v50 = vmul.f32 1.442695, %v601_v53 }
 0x111   : > { %v685_v40 = vmul.f32 1.442695, %v602_v54  ;;  %v2338_v41 = vpop.eup %1386  ;;  %v453_v9 = vpop.xlane.xlu0 %452  ;;  %v811_v3 = vsel %vm390_vm0, %v2336_v19, 0.0 }
 0x112   : > { %v456_v28 = vpop.xlane.xlu1 %455  ;;  %1396 = vpow2.f32 %v683_v50  ;;  %v603_v59 = vsub.f32 %v2045_v1, %v453_v9  ;;  %809 = vadd.xlane.f32.xlu1 %v808_v22  ;;  %812 = vadd.xlane.f32.xlu0 %v811_v3  ;;  %v814_v4 = vsel %vm390_vm0, %v2338_v41, 0.0 }
 0x113   : > { %v604_v60 = vsub.f32 %v2047_v2, %v456_v28  ;;  %1398 = vpow2.f32 %v685_v40 }
 0x114   : > { %v2346_v42 = vpop.eup %1388  ;;  %v687_v24 = vmul.f32 1.442695, %v603_v59 }
 0x115   : > { %v689_v46 = vmul.f32 1.442695, %v604_v60  ;;  %v2348_v47 = vpop.eup %1390  ;;  %v459_v8 = vpop.xlane.xlu0 %458  ;;  %v817_v55 = vsel %vm390_vm0, %v2346_v42, 0.0 }
 0x116   : > { %v462_v34 = vpop.xlane.xlu1 %461  ;;  %1400 = vpow2.f32 %v687_v24  ;;  %v605_v1 = vsub.f32 %v2055_v11, %v459_v8  ;;  %815 = vadd.xlane.f32.xlu1 %v814_v4  ;;  %818 = vadd.xlane.f32.xlu0 %v817_v55  ;;  %v820_v15 = vsel %vm390_vm0, %v2348_v47, 0.0 }
 0x117   : > { %v606_v2 = vsub.f32 %v2057_v12, %v462_v34  ;;  %1402 = vpow2.f32 %v689_v46 }
 0x118   : > { %v2356_v63 = vpop.eup %1392  ;;  %v691_v33 = vmul.f32 1.442695, %v605_v1 }
 0x119   : > { %v693_v53 = vmul.f32 1.442695, %v606_v2  ;;  %v2358_v54 = vpop.eup %1394  ;;  %v465_v22 = vpop.xlane.xlu0 %464  ;;  %v823_v50 = vsel %vm390_vm0, %v2356_v63, 0.0 }
 0x11a   : > { %v468_v40 = vpop.xlane.xlu1 %467  ;;  %1404 = vpow2.f32 %v691_v33  ;;  %v607_v11 = vsub.f32 %v2066_v20, %v465_v22  ;;  %821 = vadd.xlane.f32.xlu1 %v820_v15  ;;  %824 = vadd.xlane.f32.xlu0 %v823_v50  ;;  %v826_v9 = vsel %vm390_vm0, %v2358_v54, 0.0 }
 0x11b   : > { %v608_v12 = vsub.f32 %v2068_v23, %v468_v40  ;;  %1406 = vpow2.f32 %v693_v53 }
 0x11c   : > { %v2366_v3 = vpop.eup %1396  ;;  %v695_v28 = vmul.f32 1.442695, %v607_v11 }
 0x11d   : > { %v697_v59 = vmul.f32 1.442695, %v608_v12  ;;  %v2368_v60 = vpop.eup %1398  ;;  %v471_v4 = vpop.xlane.xlu0 %470  ;;  %v829_v24 = vsel %vm390_vm0, %v2366_v3, 0.0 }
 0x11e   : > { %v474_v46 = vpop.xlane.xlu1 %473  ;;  %1408 = vpow2.f32 %v695_v28  ;;  %v609_v20 = vsub.f32 %v2076_v30, %v471_v4  ;;  %827 = vadd.xlane.f32.xlu1 %v826_v9  ;;  %830 = vadd.xlane.f32.xlu0 %v829_v24  ;;  %v832_v8 = vsel %vm390_vm0, %v2368_v60, 0.0 }
 0x11f   : > { %v610_v23 = vsub.f32 %v2078_v31, %v474_v46  ;;  %1410 = vpow2.f32 %v697_v59 }
 0x120   : > { %v2376_v55 = vpop.eup %1400  ;;  %v699_v34 = vmul.f32 1.442695, %v609_v20 }
 0x121   : > { %v701_v1 = vmul.f32 1.442695, %v610_v23  ;;  %v2378_v2 = vpop.eup %1402  ;;  %v477_v15 = vpop.xlane.xlu0 %476  ;;  %v835_v33 = vsel %vm390_vm0, %v2376_v55, 0.0 }
 0x122   : > { %v480_v53 = vpop.xlane.xlu1 %479  ;;  %1412 = vpow2.f32 %v699_v34  ;;  %v611_v30 = vsub.f32 %v2086_v38, %v477_v15  ;;  %833 = vadd.xlane.f32.xlu1 %v832_v8  ;;  %836 = vadd.xlane.f32.xlu0 %v835_v33  ;;  %v838_v22 = vsel %vm390_vm0, %v2378_v2, 0.0 }
 0x123   : > { %v612_v31 = vsub.f32 %v2088_v39, %v480_v53  ;;  %1414 = vpow2.f32 %v701_v1 }
 0x124   : > { %v2386_v50 = vpop.eup %1404  ;;  %v703_v40 = vmul.f32 1.442695, %v611_v30 }
 0x125   : > { %v705_v11 = vmul.f32 1.442695, %v612_v31  ;;  %v2388_v12 = vpop.eup %1406  ;;  %v483_v9 = vpop.xlane.xlu0 %482  ;;  %v841_v28 = vsel %vm390_vm0, %v2386_v50, 0.0 }
 0x126   : > { %v486_v59 = vpop.xlane.xlu1 %485  ;;  %1416 = vpow2.f32 %v703_v40  ;;  %v613_v38 = vsub.f32 %v2096_v48, %v483_v9  ;;  %839 = vadd.xlane.f32.xlu1 %v838_v22  ;;  %842 = vadd.xlane.f32.xlu0 %v841_v28  ;;  %v844_v4 = vsel %vm390_vm0, %v2388_v12, 0.0 }
 0x127   : > { %v614_v39 = vsub.f32 %v2098_v49, %v486_v59  ;;  %1418 = vpow2.f32 %v705_v11 }
 0x128   : > { %v2396_v24 = vpop.eup %1408  ;;  %v707_v46 = vmul.f32 1.442695, %v613_v38 }
 0x129   : > { %v709_v20 = vmul.f32 1.442695, %v614_v39  ;;  %v2398_v23 = vpop.eup %1410  ;;  %v489_v8 = vpop.xlane.xlu0 %488  ;;  %v847_v34 = vsel %vm390_vm0, %v2396_v24, 0.0 }
 0x12a   : > { %v492_v1 = vpop.xlane.xlu1 %491  ;;  %1420 = vpow2.f32 %v707_v46  ;;  %v615_v48 = vsub.f32 %v2107_v57, %v489_v8  ;;  %845 = vadd.xlane.f32.xlu1 %v844_v4  ;;  %848 = vadd.xlane.f32.xlu0 %v847_v34  ;;  %v850_v15 = vsel %vm390_vm0, %v2398_v23, 0.0 }
 0x12b   : > { %v616_v49 = vsub.f32 %v2109_v58, %v492_v1  ;;  %1422 = vpow2.f32 %v709_v20 }
 0x12c   : > { %v2406_v33 = vpop.eup %1412  ;;  %v711_v53 = vmul.f32 1.442695, %v615_v48 }
 0x12d   : > { %v713_v30 = vmul.f32 1.442695, %v616_v49  ;;  %v2408_v31 = vpop.eup %1414  ;;  %v495_v22 = vpop.xlane.xlu0 %494  ;;  %v853_v40 = vsel %vm390_vm0, %v2406_v33, 0.0 }
 0x12e   : > { %v498_v11 = vpop.xlane.xlu1 %497  ;;  %1424 = vpow2.f32 %v711_v53  ;;  %v617_v57 = vsub.f32 %v2117_v5, %v495_v22  ;;  %851 = vadd.xlane.f32.xlu1 %v850_v15  ;;  %854 = vadd.xlane.f32.xlu0 %v853_v40  ;;  %v856_v9 = vsel %vm390_vm0, %v2408_v31, 0.0 }
 0x12f   : > { %v618_v58 = vsub.f32 %v2119_v6, %v498_v11  ;;  %1426 = vpow2.f32 %v713_v30 }
 0x130   : > { %v2416_v28 = vpop.eup %1416  ;;  %v715_v59 = vmul.f32 1.442695, %v617_v57 }
 0x131   : > { %v717_v38 = vmul.f32 1.442695, %v618_v58  ;;  %v2418_v39 = vpop.eup %1418  ;;  %v501_v4 = vpop.xlane.xlu0 %500  ;;  %v859_v46 = vsel %vm390_vm0, %v2416_v28, 0.0 }
 0x132   : > { %v504_v20 = vpop.xlane.xlu1 %503  ;;  %1428 = vpow2.f32 %v715_v59  ;;  %v619_v5 = vsub.f32 %v2127_v17, %v501_v4  ;;  %857 = vadd.xlane.f32.xlu1 %v856_v9  ;;  %860 = vadd.xlane.f32.xlu0 %v859_v46  ;;  %v862_v8 = vsel %vm390_vm0, %v2418_v39, 0.0 }
 0x133   : > { %v620_v6 = vsub.f32 %v2129_v18, %v504_v20  ;;  %1430 = vpow2.f32 %v717_v38 }
 0x134   : > { %v2426_v34 = vpop.eup %1420  ;;  %v719_v1 = vmul.f32 1.442695, %v619_v5 }
 0x135   : > { %v721_v48 = vmul.f32 1.442695, %v620_v6  ;;  %v2428_v49 = vpop.eup %1422  ;;  %v507_v15 = vpop.xlane.xlu0 %506  ;;  %v865_v53 = vsel %vm390_vm0, %v2426_v34, 0.0 }
 0x136   : > { %v510_v30 = vpop.xlane.xlu1 %509  ;;  %1432 = vpow2.f32 %v719_v1  ;;  %v621_v17 = vsub.f32 %v2137_v27, %v507_v15  ;;  %863 = vadd.xlane.f32.xlu1 %v862_v8  ;;  %866 = vadd.xlane.f32.xlu0 %v865_v53  ;;  %v868_v22 = vsel %vm390_vm0, %v2428_v49, 0.0 }
 0x137   : > { %v622_v18 = vsub.f32 %v2139_v32, %v510_v30  ;;  %1434 = vpow2.f32 %v721_v48 }
 0x138   : > { %v2436_v40 = vpop.eup %1424  ;;  %v723_v11 = vmul.f32 1.442695, %v621_v17 }
 0x139   : > { %v725_v57 = vmul.f32 1.442695, %v622_v18  ;;  %v2438_v58 = vpop.eup %1426  ;;  %v513_v9 = vpop.xlane.xlu0 %512  ;;  %v871_v59 = vsel %vm390_vm0, %v2436_v40, 0.0 }
 0x13a   : > { %v516_v38 = vpop.xlane.xlu1 %515  ;;  %1436 = vpow2.f32 %v723_v11  ;;  %v623_v27 = vsub.f32 %v2148_v44, %v513_v9  ;;  %869 = vadd.xlane.f32.xlu1 %v868_v22  ;;  %872 = vadd.xlane.f32.xlu0 %v871_v59  ;;  %v874_v4 = vsel %vm390_vm0, %v2438_v58, 0.0 }
 0x13b   : > { %v624_v32 = vsub.f32 %v2150_v45, %v516_v38  ;;  %1438 = vpow2.f32 %v725_v57 }
 0x13c   : > { %v2446_v46 = vpop.eup %1428  ;;  %v727_v20 = vmul.f32 1.442695, %v623_v27 }
 0x13d   : > { %v729_v5 = vmul.f32 1.442695, %v624_v32  ;;  %v2448_v6 = vpop.eup %1430  ;;  %v519_v8 = vpop.xlane.xlu0 %518  ;;  %v877_v1 = vsel %vm390_vm0, %v2446_v46, 0.0 }
 0x13e   : > { %v522_v48 = vpop.xlane.xlu1 %521  ;;  %1440 = vpow2.f32 %v727_v20  ;;  %v625_v44 = vsub.f32 %v2158_v56, %v519_v8  ;;  %875 = vadd.xlane.f32.xlu1 %v874_v4  ;;  %878 = vadd.xlane.f32.xlu0 %v877_v1  ;;  %v880_v15 = vsel %vm390_vm0, %v2448_v6, 0.0 }
 0x13f   : > { %v626_v45 = vsub.f32 %v2160_v61, %v522_v48  ;;  %1442 = vpow2.f32 %v729_v5 }
 0x140   : > { %v2456_v53 = vpop.eup %1432  ;;  %v731_v30 = vmul.f32 1.442695, %v625_v44 }
 0x141   : > { %v733_v17 = vmul.f32 1.442695, %v626_v45  ;;  %v2458_v18 = vpop.eup %1434  ;;  %v525_v22 = vpop.xlane.xlu0 %524  ;;  %v883_v11 = vsel %vm390_vm0, %v2456_v53, 0.0 }
 0x142   : > { %v528_v57 = vpop.xlane.xlu1 %527  ;;  %1444 = vpow2.f32 %v731_v30  ;;  %v627_v56 = vsub.f32 %v2168_v10, %v525_v22  ;;  %881 = vadd.xlane.f32.xlu1 %v880_v15  ;;  %884 = vadd.xlane.f32.xlu0 %v883_v11  ;;  %v886_v9 = vsel %vm390_vm0, %v2458_v18, 0.0 }
 0x143   : > { %v628_v61 = vsub.f32 %v2170_v13, %v528_v57  ;;  %1446 = vpow2.f32 %v733_v17 }
 0x144   : > { %v2466_v59 = vpop.eup %1436  ;;  %v735_v38 = vmul.f32 1.442695, %v627_v56 }
 0x145   : > { %v737_v27 = vmul.f32 1.442695, %v628_v61  ;;  %v2468_v32 = vpop.eup %1438  ;;  %v531_v4 = vpop.xlane.xlu0 %530  ;;  %v889_v20 = vsel %vm390_vm0, %v2466_v59, 0.0 }
 0x146   : > { %v534_v5 = vpop.xlane.xlu1 %533  ;;  %1448 = vpow2.f32 %v735_v38  ;;  %v629_v10 = vsub.f32 %v2178_v26, %v531_v4  ;;  %887 = vadd.xlane.f32.xlu1 %v886_v9  ;;  %890 = vadd.xlane.f32.xlu0 %v889_v20  ;;  %v892_v8 = vsel %vm390_vm0, %v2468_v32, 0.0 }
 0x147   : > { %v630_v13 = vsub.f32 %v2180_v36, %v534_v5  ;;  %1450 = vpow2.f32 %v737_v27  ;;  %v2887_v36 = vld [vmem:[#allocation11_spill] sm:$0xff]  ;;  %v2889_v5 = vld [vmem:[#allocation13_spill] sm:$0xff] }
 0x148   : > { %v2476_v1 = vpop.eup %1440  ;;  %v739_v48 = vmul.f32 1.442695, %v629_v10 }
 0x149   : > { %v741_v44 = vmul.f32 1.442695, %v630_v13  ;;  %v2478_v45 = vpop.eup %1442  ;;  %v537_v15 = vpop.xlane.xlu0 %536  ;;  %v895_v30 = vsel %vm390_vm0, %v2476_v1, 0.0 }
 0x14a   : > { %v540_v17 = vpop.xlane.xlu1 %539  ;;  %1452 = vpow2.f32 %v739_v48  ;;  %v631_v26 = vsub.f32 %v2189_v52, %v537_v15  ;;  %893 = vadd.xlane.f32.xlu1 %v892_v8  ;;  %896 = vadd.xlane.f32.xlu0 %v895_v30  ;;  %v898_v11 = vsel %vm390_vm0, %v2478_v45, 0.0  ;;  %v2888_v52 = vld [vmem:[#allocation12_spill] sm:$0xff] }
 0x14b   : > { %v632_v22 = vsub.f32 %v2887_v36, %v540_v17  ;;  %1454 = vpow2.f32 %v741_v44  ;;  %v2890_v36 = vld [vmem:[#allocation14_spill] sm:$0xff] }
 0x14c   : > { %v2486_v57 = vpop.eup %1444  ;;  %v743_v56 = vmul.f32 1.442695, %v631_v26 }
 0x14d   : > { %v745_v61 = vmul.f32 1.442695, %v632_v22  ;;  %v2488_v9 = vpop.eup %1446  ;;  %v543_v38 = vpop.xlane.xlu0 %542  ;;  %v901_v27 = vsel %vm390_vm0, %v2486_v57, 0.0 }
 0x14e   : > { %v546_v4 = vpop.xlane.xlu1 %545  ;;  %1456 = vpow2.f32 %v743_v56  ;;  %v633_v20 = vsub.f32 %v2888_v52, %v543_v38  ;;  %899 = vadd.xlane.f32.xlu1 %v898_v11  ;;  %902 = vadd.xlane.f32.xlu0 %v901_v27  ;;  %v904_v13 = vsel %vm390_vm0, %v2488_v9, 0.0  ;;  %v2891_v11 = vld [vmem:[#allocation15_spill] sm:$0xff] }
 0x14f   : > { %v634_v10 = vsub.f32 %v2889_v5, %v546_v4  ;;  %1458 = vpow2.f32 %v745_v61 }
 0x150   : > { %v2496_v8 = vpop.eup %1448  ;;  %v747_v48 = vmul.f32 1.442695, %v633_v20 }
 0x151   : > { %v749_v44 = vmul.f32 1.442695, %v634_v10  ;;  %v2498_v15 = vpop.eup %1450  ;;  %v549_v30 = vpop.xlane.xlu0 %548  ;;  %v907_v17 = vsel %vm390_vm0, %v2496_v8, 0.0 }
 0x152   : > { %v552_v26 = vpop.xlane.xlu1 %551  ;;  %1460 = vpow2.f32 %v747_v48  ;;  %v635_v22 = vsub.f32 %v2890_v36, %v549_v30  ;;  %905 = vadd.xlane.f32.xlu1 %v904_v13  ;;  %908 = vadd.xlane.f32.xlu0 %v907_v17  ;;  %v910_v61 = vsel %vm390_vm0, %v2498_v15, 0.0  ;;  %v2894_v13 = vld [vmem:[#allocation16_spill] sm:$0xff] }
 0x153   : > { %v636_v56 = vsub.f32 %v2891_v11, %v552_v26  ;;  %1462 = vpow2.f32 %v749_v44  ;;  %v2895_v44 = vld [vmem:[#allocation17_spill] sm:$0xff] }
 0x154   : > { %v2506_v38 = vpop.eup %1452  ;;  %v751_v27 = vmul.f32 1.442695, %v635_v22 }
 0x155   : > { %2892 = vst [vmem:[#allocation11_spill] sm:$0xff] %v2506_v38  ;;  %v753_v4 = vmul.f32 1.442695, %v636_v56  ;;  %v2508_v52 = vpop.eup %1454  ;;  %v555_v20 = vpop.xlane.xlu0 %554  ;;  %v913_v5 = vsel %vm390_vm0, %v2506_v38, 0.0 }
 0x156   : > { %2893 = vst [vmem:[#allocation12_spill] sm:$0xff] %v2508_v52  ;;  %v558_v10 = vpop.xlane.xlu1 %557  ;;  %1464 = vpow2.f32 %v751_v27  ;;  %v637_v48 = vsub.f32 %v2894_v13, %v555_v20  ;;  %911 = vadd.xlane.f32.xlu1 %v910_v61  ;;  %914 = vadd.xlane.f32.xlu0 %v913_v5  ;;  %v916_v17 = vsel %vm390_vm0, %v2508_v52, 0.0  ;;  %v2898_v61 = vld [vmem:[#allocation18_spill] sm:$0xff] }
 0x157   : > { %v638_v30 = vsub.f32 %v2895_v44, %v558_v10  ;;  %1466 = vpow2.f32 %v753_v4  ;;  %v2899_v4 = vld [vmem:[#allocation19_spill] sm:$0xff] }
 0x158   : > { %v2516_v26 = vpop.eup %1456  ;;  %v755_v36 = vmul.f32 1.442695, %v637_v48 }
 0x159   : > { %2896 = vst [vmem:[#allocation13_spill] sm:$0xff] %v2516_v26  ;;  %v757_v22 = vmul.f32 1.442695, %v638_v30  ;;  %v2518_v11 = vpop.eup %1458  ;;  %v561_v56 = vpop.xlane.xlu0 %560  ;;  %v919_v27 = vsel %vm390_vm0, %v2516_v26, 0.0 }
 0x15a   : > { %2897 = vst [vmem:[#allocation14_spill] sm:$0xff] %v2518_v11  ;;  %v564_v38 = vpop.xlane.xlu1 %563  ;;  %1468 = vpow2.f32 %v755_v36  ;;  %v639_v20 = vsub.f32 %v2898_v61, %v561_v56  ;;  %917 = vadd.xlane.f32.xlu1 %v916_v17  ;;  %920 = vadd.xlane.f32.xlu0 %v919_v27  ;;  %v922_v10 = vsel %vm390_vm0, %v2518_v11, 0.0  ;;  %v2902_v17 = vld [vmem:[#allocation20_spill] sm:$0xff] }
 0x15b   : > { %v640_v5 = vsub.f32 %v2899_v4, %v564_v38  ;;  %1470 = vpow2.f32 %v757_v22  ;;  %v2903_v38 = vld [vmem:[#allocation21_spill] sm:$0xff] }
 0x15c   : > { %v2526_v13 = vpop.eup %1460  ;;  %v759_v48 = vmul.f32 1.442695, %v639_v20 }
 0x15d   : > { %2900 = vst [vmem:[#allocation15_spill] sm:$0xff] %v2526_v13  ;;  %v761_v44 = vmul.f32 1.442695, %v640_v5  ;;  %v2528_v30 = vpop.eup %1462  ;;  %v567_v52 = vpop.xlane.xlu0 %566  ;;  %v925_v36 = vsel %vm390_vm0, %v2526_v13, 0.0 }
 0x15e   : > { %2901 = vst [vmem:[#allocation16_spill] sm:$0xff] %v2528_v30  ;;  %v570_v26 = vpop.xlane.xlu1 %569  ;;  %1472 = vpow2.f32 %v759_v48  ;;  %v641_v56 = vsub.f32 %v2902_v17, %v567_v52  ;;  %923 = vadd.xlane.f32.xlu1 %v922_v10  ;;  %926 = vadd.xlane.f32.xlu0 %v925_v36  ;;  %v928_v27 = vsel %vm390_vm0, %v2528_v30, 0.0  ;;  %v2905_v52 = vld [vmem:[#allocation22_spill] sm:$0xff] }
 0x15f   : > { %v642_v22 = vsub.f32 %v2903_v38, %v570_v26  ;;  %1474 = vpow2.f32 %v761_v44  ;;  %v2906_v26 = vld [vmem:[#allocation23_spill] sm:$0xff] }
 0x160   : > { %v2536_v61 = vpop.eup %1464  ;;  %v763_v20 = vmul.f32 1.442695, %v641_v56 }
 0x161   : > { %2904 = vst [vmem:[#allocation17_spill] sm:$0xff] %v2536_v61  ;;  %v765_v4 = vmul.f32 1.442695, %v642_v22  ;;  %v2538_v5 = vpop.eup %1466  ;;  %v573_v11 = vpop.xlane.xlu0 %572  ;;  %v931_v48 = vsel %vm390_vm0, %v2536_v61, 0.0 }
 0x162   : > { %v576_v13 = vpop.xlane.xlu1 %575  ;;  %1476 = vpow2.f32 %v763_v20  ;;  %v643_v10 = vsub.f32 %v2905_v52, %v573_v11  ;;  %929 = vadd.xlane.f32.xlu1 %v928_v27  ;;  %932 = vadd.xlane.f32.xlu0 %v931_v48  ;;  %v934_v36 = vsel %vm390_vm0, %v2538_v5, 0.0  ;;  %v2908_v11 = vld [vmem:[#allocation24_spill] sm:$0xff] }
 0x163   : > { %v644_v44 = vsub.f32 %v2906_v26, %v576_v13  ;;  %1478 = vpow2.f32 %v765_v4  ;;  %v2909_v13 = vld [vmem:[#allocation25_spill] sm:$0xff] }
 0x164   : > { %v2546_v17 = vpop.eup %1468  ;;  %v767_v56 = vmul.f32 1.442695, %v643_v10 }
 0x165   : > { %2907 = vst [vmem:[#allocation18_spill] sm:$0xff] %v2546_v17  ;;  %v769_v38 = vmul.f32 1.442695, %v644_v44  ;;  %v2548_v22 = vpop.eup %1470  ;;  %v579_v30 = vpop.xlane.xlu0 %578  ;;  %v937_v20 = vsel %vm390_vm0, %v2546_v17, 0.0 }
 0x166   : > { %v582_v61 = vpop.xlane.xlu1 %581  ;;  %1480 = vpow2.f32 %v767_v56  ;;  %v645_v27 = vsub.f32 %v2908_v11, %v579_v30  ;;  %935 = vadd.xlane.f32.xlu1 %v934_v36  ;;  %938 = vadd.xlane.f32.xlu0 %v937_v20  ;;  %v940_v48 = vsel %vm390_vm0, %v2548_v22, 0.0 }
 0x167   : > { %v646_v4 = vsub.f32 %v2909_v13, %v582_v61  ;;  %1482 = vpow2.f32 %v769_v38 }
 0x168   : > { %v2556_v52 = vpop.eup %1472  ;;  %v771_v10 = vmul.f32 1.442695, %v645_v27 }
 0x169   : > { %v773_v26 = vmul.f32 1.442695, %v646_v4  ;;  %v2558_v44 = vpop.eup %1474  ;;  %v943_v17 = vsel %vm390_vm0, %v2556_v52, 0.0 }
 0x16a   : > { %1484 = vpow2.f32 %v771_v10  ;;  %941 = vadd.xlane.f32.xlu1 %v940_v48  ;;  %944 = vadd.xlane.f32.xlu0 %v943_v17  ;;  %v946_v30 = vsel %vm390_vm0, %v2558_v44, 0.0 }
 0x16b   : > { %1486 = vpow2.f32 %v773_v26 }
 0x16c   : > { %v2564_v61 = vpop.eup %1476 }
 0x16d   : > { %v2566_v36 = vpop.eup %1478  ;;  %v949_v56 = vsel %vm390_vm0, %v2564_v61, 0.0 }
 0x16e   : > { %947 = vadd.xlane.f32.xlu1 %v946_v30  ;;  %950 = vadd.xlane.f32.xlu0 %v949_v56  ;;  %v952_v38 = vsel %vm390_vm0, %v2566_v36, 0.0 }
 0x170   : > { %v2572_v20 = vpop.eup %1480 }
 0x171   : > { %v2574_v11 = vpop.eup %1482  ;;  %v955_v17 = vsel %vm390_vm0, %v2572_v20, 0.0 }
 0x172   : > { %2910 = vst [vmem:[#allocation19_spill] sm:$0xff] %v2574_v11  ;;  %953 = vadd.xlane.f32.xlu1 %v952_v38  ;;  %956 = vadd.xlane.f32.xlu0 %v955_v17  ;;  %v958_v27 = vsel %vm390_vm0, %v2574_v11, 0.0 }
 0x174   : > { %v2580_v13 = vpop.eup %1484 }
 0x175   : > { %2911 = vst [vmem:[#allocation20_spill] sm:$0xff] %v2580_v13  ;;  %v2582_v4 = vpop.eup %1486  ;;  %v961_v48 = vsel %vm390_vm0, %v2580_v13, 0.0 }
 0x176   : > { %959 = vadd.xlane.f32.xlu1 %v958_v27  ;;  %962 = vadd.xlane.f32.xlu0 %v961_v48  ;;  %v964_v10 = vsel %vm390_vm0, %v2582_v4, 0.0 }
 0x17a   : > { %965 = vadd.xlane.f32.xlu1 %v964_v10 }
 0x187   : > { %v777_v26 = vpop.xlane.xlu0 %776 }
 0x188   : > { %1488 = vrcp.f32 %v777_v26 }
 0x18b   : > { %v780_v30 = vpop.xlane.xlu1 %779  ;;  %v783_v56 = vpop.xlane.xlu0 %782 }
 0x18c   : > { %1490 = vrcp.f32 %v780_v30 }
 0x18d   : > { %1492 = vrcp.f32 %v783_v56 }
 0x18f   : > { %v786_v38 = vpop.xlane.xlu1 %785  ;;  %v789_v17 = vpop.xlane.xlu0 %788 }
 0x190   : > { %1494 = vrcp.f32 %v786_v38 }
 0x191   : > { %1496 = vrcp.f32 %v789_v17 }
 0x192   : > { %v1489_v11 = vpop.eup %1488 }
 0x193   : > { %v1031_v13 = vmul.f32 %v1489_v11, %v2276_v0  ;;  %v792_v27 = vpop.xlane.xlu1 %791  ;;  %v795_v48 = vpop.xlane.xlu0 %794 }
 0x194   : > { %1498 = vrcp.f32 %v792_v27 }
 0x195   : > { %1095 = vst.msk [vmem:[%s2591_s20] sm:$0xff] %vm390_vm0, %v1031_v13  ;;  %1500 = vrcp.f32 %v795_v48 }
 0x196   : > { %v1491_v10 = vpop.eup %1490 }
 0x197   : > { %v1493_v26 = vpop.eup %1492  ;;  %v1032_v30 = vmul.f32 %v1491_v10, %v2286_v51  ;;  %v798_v56 = vpop.xlane.xlu1 %797 }
 0x198   : > { %v801_v38 = vpop.xlane.xlu0 %800  ;;  %v1033_v0 = vmul.f32 %v1493_v26, %v2278_v62  ;;  %1502 = vrcp.f32 %v798_v56 }
 0x199   : > { %1096 = vst.msk [vmem:[%s2591_s20 + $0x8] sm:$0xff] %vm390_vm0, %v1032_v30  ;;  %1504 = vrcp.f32 %v801_v38 }
 0x19a   : > { %v1495_v11 = vpop.eup %1494  ;;  %1097 = vst.msk [vmem:[%s2591_s20 + $0x10] sm:$0xff] %vm390_vm0, %v1033_v0 }
 0x19b   : > { %v1497_v17 = vpop.eup %1496  ;;  %v1034_v13 = vmul.f32 %v1495_v11, %v2288_v37  ;;  %v804_v27 = vpop.xlane.xlu1 %803 }
 0x19c   : > { %v807_v48 = vpop.xlane.xlu0 %806  ;;  %v1035_v51 = vmul.f32 %v1497_v17, %v2296_v43  ;;  %1506 = vrcp.f32 %v804_v27 }
 0x19d   : > { %1098 = vst.msk [vmem:[%s2591_s20 + $0x18] sm:$0xff] %vm390_vm0, %v1034_v13  ;;  %1508 = vrcp.f32 %v807_v48 }
 0x19e   : > { %v1499_v62 = vpop.eup %1498  ;;  %1099 = vst.msk [vmem:[%s2591_s20 + $0x20] sm:$0xff] %vm390_vm0, %v1035_v51 }
 0x19f   : > { %v1501_v10 = vpop.eup %1500  ;;  %v1036_v26 = vmul.f32 %v1499_v62, %v2298_v7  ;;  %v810_v30 = vpop.xlane.xlu1 %809 }
 0x1a0   : > { %v813_v56 = vpop.xlane.xlu0 %812  ;;  %v1037_v37 = vmul.f32 %v1501_v10, %v2306_v16  ;;  %1510 = vrcp.f32 %v810_v30 }
 0x1a1   : > { %1100 = vst.msk [vmem:[%s2591_s20 + $0x28] sm:$0xff] %vm390_vm0, %v1036_v26  ;;  %1512 = vrcp.f32 %v813_v56 }
 0x1a2   : > { %v1503_v43 = vpop.eup %1502  ;;  %1101 = vst.msk [vmem:[%s2591_s20 + $0x30] sm:$0xff] %vm390_vm0, %v1037_v37 }
 0x1a3   : > { %v1505_v38 = vpop.eup %1504  ;;  %v1038_v0 = vmul.f32 %v1503_v43, %v2308_v21  ;;  %v816_v11 = vpop.xlane.xlu1 %815 }
 0x1a4   : > { %v819_v17 = vpop.xlane.xlu0 %818  ;;  %v1039_v7 = vmul.f32 %v1505_v38, %v2316_v14  ;;  %1514 = vrcp.f32 %v816_v11 }
 0x1a5   : > { %1102 = vst.msk [vmem:[%s2591_s20 + $0x38] sm:$0xff] %vm390_vm0, %v1038_v0  ;;  %1516 = vrcp.f32 %v819_v17 }
 0x1a6   : > { %v1507_v16 = vpop.eup %1506  ;;  %1103 = vst.msk [vmem:[%s2591_s20 + $0x40] sm:$0xff] %vm390_vm0, %v1039_v7 }
 0x1a7   : > { %v1509_v13 = vpop.eup %1508  ;;  %v1040_v27 = vmul.f32 %v1507_v16, %v2318_v29  ;;  %v822_v48 = vpop.xlane.xlu1 %821 }
 0x1a8   : > { %v825_v51 = vpop.xlane.xlu0 %824  ;;  %v1041_v21 = vmul.f32 %v1509_v13, %v2326_v25  ;;  %1518 = vrcp.f32 %v822_v48 }
 0x1a9   : > { %1104 = vst.msk [vmem:[%s2591_s20 + $0x48] sm:$0xff] %vm390_vm0, %v1040_v27  ;;  %1520 = vrcp.f32 %v825_v51 }
 0x1aa   : > { %v1511_v14 = vpop.eup %1510  ;;  %1105 = vst.msk [vmem:[%s2591_s20 + $0x50] sm:$0xff] %vm390_vm0, %v1041_v21 }
 0x1ab   : > { %v1513_v62 = vpop.eup %1512  ;;  %v1042_v10 = vmul.f32 %v1511_v14, %v2328_v35  ;;  %v828_v26 = vpop.xlane.xlu1 %827 }
 0x1ac   : > { %v831_v30 = vpop.xlane.xlu0 %830  ;;  %v1043_v29 = vmul.f32 %v1513_v62, %v2336_v19  ;;  %1522 = vrcp.f32 %v828_v26 }
 0x1ad   : > { %1106 = vst.msk [vmem:[%s2591_s20 + $0x58] sm:$0xff] %vm390_vm0, %v1042_v10  ;;  %1524 = vrcp.f32 %v831_v30 }
 0x1ae   : > { %v1515_v25 = vpop.eup %1514  ;;  %1107 = vst.msk [vmem:[%s2591_s20 + $0x60] sm:$0xff] %vm390_vm0, %v1043_v29 }
 0x1af   : > { %v1517_v56 = vpop.eup %1516  ;;  %v1044_v37 = vmul.f32 %v1515_v25, %v2338_v41  ;;  %v834_v43 = vpop.xlane.xlu1 %833 }
 0x1b0   : > { %v837_v38 = vpop.xlane.xlu0 %836  ;;  %v1045_v35 = vmul.f32 %v1517_v56, %v2346_v42  ;;  %1526 = vrcp.f32 %v834_v43 }
 0x1b1   : > { %1108 = vst.msk [vmem:[%s2591_s20 + $0x68] sm:$0xff] %vm390_vm0, %v1044_v37  ;;  %1528 = vrcp.f32 %v837_v38 }
 0x1b2   : > { %v1519_v19 = vpop.eup %1518  ;;  %1109 = vst.msk [vmem:[%s2591_s20 + $0x70] sm:$0xff] %vm390_vm0, %v1045_v35 }
 0x1b3   : > { %v1521_v0 = vpop.eup %1520  ;;  %v1046_v11 = vmul.f32 %v1519_v19, %v2348_v47  ;;  %v840_v17 = vpop.xlane.xlu1 %839 }
 0x1b4   : > { %v843_v7 = vpop.xlane.xlu0 %842  ;;  %v1047_v41 = vmul.f32 %v1521_v0, %v2356_v63  ;;  %1530 = vrcp.f32 %v840_v17 }
 0x1b5   : > { %1110 = vst.msk [vmem:[%s2591_s20 + $0x78] sm:$0xff] %vm390_vm0, %v1046_v11  ;;  %1532 = vrcp.f32 %v843_v7 }
 0x1b6   : > { %v1523_v42 = vpop.eup %1522  ;;  %1111 = vst.msk [vmem:[%s2591_s20 + $0x80] sm:$0xff] %vm390_vm0, %v1047_v41 }
 0x1b7   : > { %v1525_v16 = vpop.eup %1524  ;;  %v1048_v13 = vmul.f32 %v1523_v42, %v2358_v54  ;;  %v846_v27 = vpop.xlane.xlu1 %845 }
 0x1b8   : > { %v849_v48 = vpop.xlane.xlu0 %848  ;;  %v1049_v47 = vmul.f32 %v1525_v16, %v2366_v3  ;;  %1534 = vrcp.f32 %v846_v27 }
 0x1b9   : > { %1112 = vst.msk [vmem:[%s2591_s20 + $0x88] sm:$0xff] %vm390_vm0, %v1048_v13  ;;  %1536 = vrcp.f32 %v849_v48 }
 0x1ba   : > { %v1527_v63 = vpop.eup %1526  ;;  %1113 = vst.msk [vmem:[%s2591_s20 + $0x90] sm:$0xff] %vm390_vm0, %v1049_v47 }
 0x1bb   : > { %v1529_v51 = vpop.eup %1528  ;;  %v1050_v21 = vmul.f32 %v1527_v63, %v2368_v60  ;;  %v852_v14 = vpop.xlane.xlu1 %851 }
 0x1bc   : > { %v855_v62 = vpop.xlane.xlu0 %854  ;;  %v1051_v54 = vmul.f32 %v1529_v51, %v2376_v55  ;;  %1538 = vrcp.f32 %v852_v14 }
 0x1bd   : > { %1114 = vst.msk [vmem:[%s2591_s20 + $0x98] sm:$0xff] %vm390_vm0, %v1050_v21  ;;  %1540 = vrcp.f32 %v855_v62 }
 0x1be   : > { %v1531_v3 = vpop.eup %1530  ;;  %1115 = vst.msk [vmem:[%s2591_s20 + $0xa0] sm:$0xff] %vm390_vm0, %v1051_v54 }
 0x1bf   : > { %v1533_v10 = vpop.eup %1532  ;;  %v1052_v26 = vmul.f32 %v1531_v3, %v2378_v2  ;;  %v858_v30 = vpop.xlane.xlu1 %857 }
 0x1c0   : > { %v861_v29 = vpop.xlane.xlu0 %860  ;;  %v1053_v60 = vmul.f32 %v1533_v10, %v2386_v50  ;;  %1542 = vrcp.f32 %v858_v30 }
 0x1c1   : > { %1116 = vst.msk [vmem:[%s2591_s20 + $0xa8] sm:$0xff] %vm390_vm0, %v1052_v26  ;;  %1544 = vrcp.f32 %v861_v29 }
 0x1c2   : > { %v1535_v55 = vpop.eup %1534  ;;  %1117 = vst.msk [vmem:[%s2591_s20 + $0xb0] sm:$0xff] %vm390_vm0, %v1053_v60 }
 0x1c3   : > { %v1537_v25 = vpop.eup %1536  ;;  %v1054_v56 = vmul.f32 %v1535_v55, %v2388_v12  ;;  %v864_v37 = vpop.xlane.xlu1 %863 }
 0x1c4   : > { %v867_v43 = vpop.xlane.xlu0 %866  ;;  %v1055_v2 = vmul.f32 %v1537_v25, %v2396_v24  ;;  %1546 = vrcp.f32 %v864_v37 }
 0x1c5   : > { %1118 = vst.msk [vmem:[%s2591_s20 + $0xb8] sm:$0xff] %vm390_vm0, %v1054_v56  ;;  %1548 = vrcp.f32 %v867_v43 }
 0x1c6   : > { %v1539_v50 = vpop.eup %1538  ;;  %1119 = vst.msk [vmem:[%s2591_s20 + $0xc0] sm:$0xff] %vm390_vm0, %v1055_v2 }
 0x1c7   : > { %v1541_v38 = vpop.eup %1540  ;;  %v1056_v35 = vmul.f32 %v1539_v50, %v2398_v23  ;;  %v870_v19 = vpop.xlane.xlu1 %869 }
 0x1c8   : > { %v873_v0 = vpop.xlane.xlu0 %872  ;;  %v1057_v12 = vmul.f32 %v1541_v38, %v2406_v33  ;;  %1550 = vrcp.f32 %v870_v19 }
 0x1c9   : > { %1120 = vst.msk [vmem:[%s2591_s20 + $0xc8] sm:$0xff] %vm390_vm0, %v1056_v35  ;;  %1552 = vrcp.f32 %v873_v0 }
 0x1ca   : > { %v1543_v24 = vpop.eup %1542  ;;  %1121 = vst.msk [vmem:[%s2591_s20 + $0xd0] sm:$0xff] %vm390_vm0, %v1057_v12 }
 0x1cb   : > { %v1545_v11 = vpop.eup %1544  ;;  %v1058_v17 = vmul.f32 %v1543_v24, %v2408_v31  ;;  %v876_v7 = vpop.xlane.xlu1 %875 }
 0x1cc   : > { %v879_v41 = vpop.xlane.xlu0 %878  ;;  %v1059_v23 = vmul.f32 %v1545_v11, %v2416_v28  ;;  %1554 = vrcp.f32 %v876_v7 }
 0x1cd   : > { %1122 = vst.msk [vmem:[%s2591_s20 + $0xd8] sm:$0xff] %vm390_vm0, %v1058_v17  ;;  %1556 = vrcp.f32 %v879_v41 }
 0x1ce   : > { %v1547_v33 = vpop.eup %1546  ;;  %1123 = vst.msk [vmem:[%s2591_s20 + $0xe0] sm:$0xff] %vm390_vm0, %v1059_v23 }
 0x1cf   : > { %v1549_v42 = vpop.eup %1548  ;;  %v1060_v16 = vmul.f32 %v1547_v33, %v2418_v39  ;;  %v882_v13 = vpop.xlane.xlu1 %881  ;;  %v2912_v33 = vld [vmem:[#allocation11_spill] sm:$0xff] }
 0x1d0   : > { %v885_v27 = vpop.xlane.xlu0 %884  ;;  %v1061_v31 = vmul.f32 %v1549_v42, %v2426_v34  ;;  %1558 = vrcp.f32 %v882_v13 }
 0x1d1   : > { %1124 = vst.msk [vmem:[%s2591_s20 + $0xe8] sm:$0xff] %vm390_vm0, %v1060_v16  ;;  %1560 = vrcp.f32 %v885_v27  ;;  %v2913_v16 = vld [vmem:[#allocation12_spill] sm:$0xff] }
 0x1d2   : > { %v1551_v28 = vpop.eup %1550  ;;  %1125 = vst.msk [vmem:[%s2591_s20 + $0xf0] sm:$0xff] %vm390_vm0, %v1061_v31 }
 0x1d3   : > { %v1553_v48 = vpop.eup %1552  ;;  %v1062_v47 = vmul.f32 %v1551_v28, %v2428_v49  ;;  %v888_v63 = vpop.xlane.xlu1 %887  ;;  %v2914_v28 = vld [vmem:[#allocation13_spill] sm:$0xff] }
 0x1d4   : > { %v891_v51 = vpop.xlane.xlu0 %890  ;;  %v1063_v39 = vmul.f32 %v1553_v48, %v2436_v40  ;;  %1562 = vrcp.f32 %v888_v63  ;;  %v2915_v63 = vld [vmem:[#allocation14_spill] sm:$0xff] }
 0x1d5   : > { %1126 = vst.msk [vmem:[%s2591_s20 + $0xf8] sm:$0xff] %vm390_vm0, %v1062_v47  ;;  %1564 = vrcp.f32 %v891_v51 }
 0x1d6   : > { %v1555_v34 = vpop.eup %1554  ;;  %1127 = vst.msk [vmem:[%s2591_s20 + $0x100] sm:$0xff] %vm390_vm0, %v1063_v39 }
 0x1d7   : > { %v1557_v21 = vpop.eup %1556  ;;  %v1064_v14 = vmul.f32 %v1555_v34, %v2438_v58  ;;  %v894_v62 = vpop.xlane.xlu1 %893 }
 0x1d8   : > { %v897_v54 = vpop.xlane.xlu0 %896  ;;  %v1065_v49 = vmul.f32 %v1557_v21, %v2446_v46  ;;  %1566 = vrcp.f32 %v894_v62  ;;  %v2916_v21 = vld [vmem:[#allocation15_spill] sm:$0xff] }
 0x1d9   : > { %1128 = vst.msk [vmem:[%s2591_s20 + $0x108] sm:$0xff] %vm390_vm0, %v1064_v14  ;;  %1568 = vrcp.f32 %v897_v54 }
 0x1da   : > { %v1559_v40 = vpop.eup %1558  ;;  %1129 = vst.msk [vmem:[%s2591_s20 + $0x110] sm:$0xff] %vm390_vm0, %v1065_v49  ;;  %v2917_v49 = vld [vmem:[#allocation16_spill] sm:$0xff] }
 0x1db   : > { %v1561_v3 = vpop.eup %1560  ;;  %v1066_v10 = vmul.f32 %v1559_v40, %v2448_v6  ;;  %v900_v26 = vpop.xlane.xlu1 %899 }
 0x1dc   : > { %v903_v30 = vpop.xlane.xlu0 %902  ;;  %v1067_v58 = vmul.f32 %v1561_v3, %v2456_v53  ;;  %1570 = vrcp.f32 %v900_v26  ;;  %v2918_v26 = vld [vmem:[#allocation17_spill] sm:$0xff] }
 0x1dd   : > { %1130 = vst.msk [vmem:[%s2591_s20 + $0x118] sm:$0xff] %vm390_vm0, %v1066_v10  ;;  %1572 = vrcp.f32 %v903_v30 }
 0x1de   : > { %v1563_v46 = vpop.eup %1562  ;;  %1131 = vst.msk [vmem:[%s2591_s20 + $0x120] sm:$0xff] %vm390_vm0, %v1067_v58 }
 0x1df   : > { %v1565_v29 = vpop.eup %1564  ;;  %v1068_v60 = vmul.f32 %v1563_v46, %v2458_v18  ;;  %v906_v55 = vpop.xlane.xlu1 %905 }
 0x1e0   : > { %v909_v25 = vpop.xlane.xlu0 %908  ;;  %v1069_v6 = vmul.f32 %v1565_v29, %v2466_v59  ;;  %1574 = vrcp.f32 %v906_v55 }
 0x1e1   : > { %1132 = vst.msk [vmem:[%s2591_s20 + $0x128] sm:$0xff] %vm390_vm0, %v1068_v60  ;;  %1576 = vrcp.f32 %v909_v25  ;;  %v2919_v25 = vld [vmem:[#allocation18_spill] sm:$0xff] }
 0x1e2   : > { %v1567_v53 = vpop.eup %1566  ;;  %1133 = vst.msk [vmem:[%s2591_s20 + $0x130] sm:$0xff] %vm390_vm0, %v1069_v6 }
 0x1e3   : > { %v1569_v56 = vpop.eup %1568  ;;  %v1070_v37 = vmul.f32 %v1567_v53, %v2468_v32  ;;  %v912_v43 = vpop.xlane.xlu1 %911 }
 0x1e4   : > { %v915_v2 = vpop.xlane.xlu0 %914  ;;  %v1071_v18 = vmul.f32 %v1569_v56, %v2476_v1  ;;  %1578 = vrcp.f32 %v912_v43 }
 0x1e5   : > { %1134 = vst.msk [vmem:[%s2591_s20 + $0x138] sm:$0xff] %vm390_vm0, %v1070_v37  ;;  %1580 = vrcp.f32 %v915_v2 }
 0x1e6   : > { %v1571_v59 = vpop.eup %1570  ;;  %1135 = vst.msk [vmem:[%s2591_s20 + $0x140] sm:$0xff] %vm390_vm0, %v1071_v18 }
 0x1e7   : > { %v1573_v50 = vpop.eup %1572  ;;  %v1072_v38 = vmul.f32 %v1571_v59, %v2478_v45  ;;  %v918_v35 = vpop.xlane.xlu1 %917 }
 0x1e8   : > { %v921_v19 = vpop.xlane.xlu0 %920  ;;  %v1073_v32 = vmul.f32 %v1573_v50, %v2486_v57  ;;  %1582 = vrcp.f32 %v918_v35 }
 0x1e9   : > { %1136 = vst.msk [vmem:[%s2591_s20 + $0x148] sm:$0xff] %vm390_vm0, %v1072_v38  ;;  %1584 = vrcp.f32 %v921_v19 }
 0x1ea   : > { %v1575_v1 = vpop.eup %1574  ;;  %1137 = vst.msk [vmem:[%s2591_s20 + $0x150] sm:$0xff] %vm390_vm0, %v1073_v32 }
 0x1eb   : > { %v1577_v0 = vpop.eup %1576  ;;  %v1074_v12 = vmul.f32 %v1575_v1, %v2488_v9  ;;  %v924_v24 = vpop.xlane.xlu1 %923  ;;  %v2920_v1 = vld [vmem:[#allocation19_spill] sm:$0xff] }
 0x1ec   : > { %v927_v11 = vpop.xlane.xlu0 %926  ;;  %v1075_v45 = vmul.f32 %v1577_v0, %v2496_v8  ;;  %1586 = vrcp.f32 %v924_v24 }
 0x1ed   : > { %1138 = vst.msk [vmem:[%s2591_s20 + $0x158] sm:$0xff] %vm390_vm0, %v1074_v12  ;;  %1588 = vrcp.f32 %v927_v11  ;;  %v2921_v12 = vld [vmem:[#allocation20_spill] sm:$0xff] }
 0x1ee   : > { %v1579_v57 = vpop.eup %1578  ;;  %1139 = vst.msk [vmem:[%s2591_s20 + $0x160] sm:$0xff] %vm390_vm0, %v1075_v45 }
 0x1ef   : > { %v1581_v17 = vpop.eup %1580  ;;  %v1076_v7 = vmul.f32 %v1579_v57, %v2498_v15  ;;  %v930_v41 = vpop.xlane.xlu1 %929 }
 0x1f0   : > { %v933_v23 = vpop.xlane.xlu0 %932  ;;  %v1077_v9 = vmul.f32 %v1581_v17, %v2912_v33  ;;  %1590 = vrcp.f32 %v930_v41 }
 0x1f1   : > { %1140 = vst.msk [vmem:[%s2591_s20 + $0x168] sm:$0xff] %vm390_vm0, %v1076_v7  ;;  %1592 = vrcp.f32 %v933_v23 }
 0x1f2   : > { %v1583_v8 = vpop.eup %1582  ;;  %1141 = vst.msk [vmem:[%s2591_s20 + $0x170] sm:$0xff] %vm390_vm0, %v1077_v9 }
 0x1f3   : > { %v1585_v42 = vpop.eup %1584  ;;  %v1078_v13 = vmul.f32 %v1583_v8, %v2913_v16  ;;  %v936_v27 = vpop.xlane.xlu1 %935 }
 0x1f4   : > { %v939_v31 = vpop.xlane.xlu0 %938  ;;  %v1079_v15 = vmul.f32 %v1585_v42, %v2914_v28  ;;  %1594 = vrcp.f32 %v936_v27 }
 0x1f5   : > { %1142 = vst.msk [vmem:[%s2591_s20 + $0x178] sm:$0xff] %vm390_vm0, %v1078_v13  ;;  %1596 = vrcp.f32 %v939_v31 }
 0x1f6   : > { %v1587_v48 = vpop.eup %1586  ;;  %1143 = vst.msk [vmem:[%s2591_s20 + $0x180] sm:$0xff] %vm390_vm0, %v1079_v15 }
 0x1f7   : > { %v1589_v47 = vpop.eup %1588  ;;  %v1080_v51 = vmul.f32 %v1587_v48, %v2915_v63  ;;  %v942_v39 = vpop.xlane.xlu1 %941 }
 0x1f8   : > { %v945_v34 = vpop.xlane.xlu0 %944  ;;  %v1081_v14 = vmul.f32 %v1589_v47, %v2916_v21  ;;  %1598 = vrcp.f32 %v942_v39 }
 0x1f9   : > { %1144 = vst.msk [vmem:[%s2591_s20 + $0x188] sm:$0xff] %vm390_vm0, %v1080_v51  ;;  %1600 = vrcp.f32 %v945_v34 }
 0x1fa   : > { %v1591_v62 = vpop.eup %1590  ;;  %1145 = vst.msk [vmem:[%s2591_s20 + $0x190] sm:$0xff] %vm390_vm0, %v1081_v14 }
 0x1fb   : > { %v1593_v54 = vpop.eup %1592  ;;  %v1082_v40 = vmul.f32 %v1591_v62, %v2917_v49  ;;  %v948_v3 = vpop.xlane.xlu1 %947 }
 0x1fc   : > { %v951_v10 = vpop.xlane.xlu0 %950  ;;  %v1083_v30 = vmul.f32 %v1593_v54, %v2918_v26  ;;  %1602 = vrcp.f32 %v948_v3 }
 0x1fd   : > { %1146 = vst.msk [vmem:[%s2591_s20 + $0x198] sm:$0xff] %vm390_vm0, %v1082_v40  ;;  %1604 = vrcp.f32 %v951_v10 }
 0x1fe   : > { %v1595_v58 = vpop.eup %1594  ;;  %1147 = vst.msk [vmem:[%s2591_s20 + $0x1a0] sm:$0xff] %vm390_vm0, %v1083_v30 }
 0x1ff   : > { %v1597_v46 = vpop.eup %1596  ;;  %v1084_v29 = vmul.f32 %v1595_v58, %v2538_v5  ;;  %v954_v60 = vpop.xlane.xlu1 %953 }
 0x200   : > { %v957_v55 = vpop.xlane.xlu0 %956  ;;  %v1085_v6 = vmul.f32 %v1597_v46, %v2919_v25  ;;  %1606 = vrcp.f32 %v954_v60 }
 0x201   : > { %1148 = vst.msk [vmem:[%s2591_s20 + $0x1a8] sm:$0xff] %vm390_vm0, %v1084_v29  ;;  %1608 = vrcp.f32 %v957_v55 }
 0x202   : > { %v1599_v53 = vpop.eup %1598  ;;  %1149 = vst.msk [vmem:[%s2591_s20 + $0x1b0] sm:$0xff] %vm390_vm0, %v1085_v6 }
 0x203   : > { %v1601_v56 = vpop.eup %1600  ;;  %v1086_v37 = vmul.f32 %v1599_v53, %v2548_v22  ;;  %v960_v43 = vpop.xlane.xlu1 %959 }
 0x204   : > { %v963_v2 = vpop.xlane.xlu0 %962  ;;  %v1087_v5 = vmul.f32 %v1601_v56, %v2556_v52  ;;  %1610 = vrcp.f32 %v960_v43 }
 0x205   : > { %1150 = vst.msk [vmem:[%s2591_s20 + $0x1b8] sm:$0xff] %vm390_vm0, %v1086_v37  ;;  %1612 = vrcp.f32 %v963_v2 }
 0x206   : > { %v1603_v18 = vpop.eup %1602  ;;  %1151 = vst.msk [vmem:[%s2591_s20 + $0x1c0] sm:$0xff] %vm390_vm0, %v1087_v5 }
 0x207   : > { %v1605_v59 = vpop.eup %1604  ;;  %v1088_v50 = vmul.f32 %v1603_v18, %v2558_v44  ;;  %v966_v22 = vpop.xlane.xlu1 %965 }
 0x208   : > { %v1089_v38 = vmul.f32 %v1605_v59, %v2564_v61  ;;  %1614 = vrcp.f32 %v966_v22 }
 0x209   : > { %1152 = vst.msk [vmem:[%s2591_s20 + $0x1c8] sm:$0xff] %vm390_vm0, %v1088_v50 }
 0x20a   : > { %v1607_v52 = vpop.eup %1606  ;;  %1153 = vst.msk [vmem:[%s2591_s20 + $0x1d0] sm:$0xff] %vm390_vm0, %v1089_v38 }
 0x20b   : > { %v1609_v35 = vpop.eup %1608  ;;  %v1090_v19 = vmul.f32 %v1607_v52, %v2566_v36 }
 0x20c   : > { %v1091_v32 = vmul.f32 %v1609_v35, %v2572_v20 }
 0x20d   : > { %1154 = vst.msk [vmem:[%s2591_s20 + $0x1d8] sm:$0xff] %vm390_vm0, %v1090_v19 }
 0x20e   : > { %v1611_v44 = vpop.eup %1610  ;;  %1155 = vst.msk [vmem:[%s2591_s20 + $0x1e0] sm:$0xff] %vm390_vm0, %v1091_v32 }
 0x20f   : > { %v1613_v61 = vpop.eup %1612  ;;  %v1092_v0 = vmul.f32 %v1611_v44, %v2920_v1 }
 0x210   : > { %v1093_v24 = vmul.f32 %v1613_v61, %v2921_v12 }
 0x211   : > { %1156 = vst.msk [vmem:[%s2591_s20 + $0x1e8] sm:$0xff] %vm390_vm0, %v1092_v0 }
 0x212   : > { %v1615_v36 = vpop.eup %1614  ;;  %1157 = vst.msk [vmem:[%s2591_s20 + $0x1f0] sm:$0xff] %vm390_vm0, %v1093_v24 }
 0x213   : > { %v1094_v20 = vmul.f32 %v1615_v36, %v2582_v4 }
 0x215   : > { %1158 = vst.msk [vmem:[%s2591_s20 + $0x1f8] sm:$0xff] %vm390_vm0, %v1094_v20 }
 0x216   : > { %1689 = shalt.err (!%p1686_p3)
}
 0x217   : > { %s1690_s14 = scalar_lea.hbm %s2786_s26, 8192  ;;  %s1694_s19 = scalar_lea.hbm %s2837_s2, 16384 }
 0x218   : > { %p1691_p12 = scmp.ne.s32.totalorder %s2786_s26, %s1690_s14  ;;  %p1695_p2 = scmp.lt.u32.totalorder %s2786_s26, %s2837_s2 }
 0x219   : > { %p1696_p4 = scmp.lt.u32.totalorder %s1694_s19, %s1690_s14  ;;  %p1698_p13 = scmp.lt.u32.totalorder %s1690_s14, %s2786_s26 }
 0x21a   : > { %p1692_p8 = pnand %p1691_p12, %p2922_p1 }
 0x21b   : > { %p1697_p6 = por %p1696_p4, %p1695_p2 }
 0x21c   : > { %p1693_p0 = pneg %p1692_p8 }
 0x21d   : > { %p1699_p11 = por %p1698_p13, %p1697_p6 }
 0x21f   : > { %p1700_p10 = pnand %p1699_p11, %p1693_p0 }
 0x221   : > { %1703 = shalt.err (!%p1700_p10)
}
 0x222   : > { %s1755_s3 = smov 128   ;;  %s1756_s5 = smov 8  }
 0x223   : > { %1307 = dma.vmem_to_hbm [thread:$0]  (%p2922_p1), %s2788_s17, 8192, %s2786_s26, %s1160_s13, %s1755_s3, %s1755_s3, %s1756_s5  }
 0x224 PF: > { %s1189_s20 = sand.u32 1, %s1734_s9   ;;  %p2923_p5 = scmp.ne.s32.totalorder %s2868_s22, 0 }
 0x225   : > { %p2924_p7 = scmp.ge.s32.totalorder %s1746_s12, 2  ;;  %s1190_s8 = scalar_lea.sflag [#allocation4], %s1189_s20 }
 0x227   : > { %p1317_p9 = pnand %p2924_p7, %p2923_p5 }
 0x229   : > { %1729 = dma.done.wait (!%p1317_p9), %s1190_s8, 8192  }
 0x22a   : > { %1731 = vsyncadd (!%p1317_p9), %s1190_s8, 4294959104  ;;  %p18_p3 = scmp.ge.s32.totalorder %s1797_s15, 4   ;;  %s2925_s9 = smov %s1738_s10 }
 0x22b   : > { %s2926_s10 = smov %s1742_s11  ;;  %s2927_s11 = smov %s1809_s18 }
 0x22c   : > { %s2928_s12 = smov %s1797_s15  ;;  %20 = sbr.rel (!%p18_p3) target bundleno = 7 (0x7), region = 86 }
 0x233   :  { %1195 = vsyncpa [#allocation3], 1 }
 0x234   :  { %1197 = vsyncpa [#allocation3 + $0x1], 1 }
 0x235   :  { %1198 = vsyncpa [#allocation6], 1 }
 0x236   :  { %1200 = vsyncpa [#allocation6 + $0x1], 1 }
 0x237   :  { %1201 = vsyncpa [#allocation4], 1 }
 0x238   :  { %1203 = vsyncpa [#allocation4 + $0x1], 1 }

</bundles_post_ra>
